<compile_context>
chip_gen: v6e
topology: v6e:2x2x1
jax: 0.10.0
libtpu: 0.0.40
codegen_flags: <defaults>
</compile_context>

<pallas_src>
import functools

import jax
import jax.numpy as jnp
import numpy as np
from jax.experimental import pallas as pl
from jax.experimental.pallas import tpu as pltpu


# ----------------------------------------------------------------------------
# Pallas kernel: fused separable triplane bilinear sampling
# ----------------------------------------------------------------------------
def _triplane_sampler_kernel(coords_ref, feat_ref, out_ref, *, C, H, W):
    """One grid step = one (batch, point-tile) pair; all 3 planes fused.

    coords_ref : (1, 6, TN)        pre-scaled pixel coords; rows 2k / 2k+1 are
                                   the width / height coordinate of plane k
    feat_ref   : (1, 3, C*H, W)    triplane features, VMEM-resident per batch
    out_ref    : (1, C, TN)        lane-dense sampled features (f32)
    """
    TN = out_ref.shape[-1]

    # pixel-index vectors for the hat factors (hoisted out of the plane loop)
    w_idx = jax.lax.broadcasted_iota(jnp.int32, (W, 1), 0).astype(jnp.float32)
    h_idx = jax.lax.broadcasted_iota(jnp.int32, (H, 1), 0).astype(jnp.float32)

    acc = jnp.zeros((C, TN), jnp.float32)
    for k in range(3):                                    # statically unrolled
        fx = coords_ref[0, 2 * k:2 * k + 1, :]            # (1, TN) width coord
        fy = coords_ref[0, 2 * k + 1:2 * k + 2, :]        # (1, TN) height coord

        # separable triangular "hat" factors == bilinear weights w/ zeros pad
        hx = jnp.maximum(1.0 - jnp.abs(fx - w_idx), 0.0)  # (W, TN)
        hy = jnp.maximum(1.0 - jnp.abs(fy - h_idx), 0.0)  # (H, TN)

        # stage 1 (MXU): contract the width axis; hx is the small stationary
        # RHS, M = C*H output rows.
        g = jnp.dot(feat_ref[0, k], hx.astype(feat_ref.dtype),
                    preferred_element_type=jnp.float32)   # (C*H, TN)

        # stage 2 (VPU + sublane reduce): contract the height axis.
        # (for H a multiple of 8 this reshape is layout-free)
        acc = acc + jnp.sum(g.reshape(C, H, TN) * hy[None, :, :], axis=1)

    out_ref[0] = acc.astype(out_ref.dtype)


# ----------------------------------------------------------------------------
# Wrapper (glue): coord transforms, layout permutes, padding, pallas_call
# ----------------------------------------------------------------------------
def masked_triplane_sampler(origins, directions, lengths, features, world2local,
                            *, tile_points=512, compute_dtype=jnp.float32):
    B = origins.shape[0]
    spatial = origins.shape[1:-1]
    R = int(np.prod(spatial))
    P = lengths.shape[-1]
    _, n_planes, C, H, W = features.shape
    assert n_planes == 3
    N = R * P

    o = origins.reshape(B, R, 3).astype(jnp.float32)
    d = directions.reshape(B, R, 3).astype(jnp.float32)
    l = lengths.reshape(B, R, P).astype(jnp.float32)

    # world -> local (pytorch3d row-vector convention: p' = p @ M[:3,:3] + M[3,:3])
    Rm = world2local[:, :3, :3]
    t = world2local[:, 3, :3]
    o_local = jnp.einsum('brc,bcd->brd', o, Rm) + t[:, None, :]
    d_local = jnp.einsum('brc,bcd->brd', d, Rm)          # rotation only

    # ray points in local coords: (B, R, P, 3)
    pts = o_local[:, :, None, :] + l[..., None] * d_local[:, :, None, :]
    pts_flat = pts.reshape(B, N, 3)

    # box mask: trivial elementwise test, kept out of the kernel so kernel
    # stores stay lane-dense.
    mask = jnp.all((pts <= 1.0) & (pts >= -1.0), axis=-1, keepdims=True)

    # grid_sample(align_corners=False) pixel coordinates per plane.
    # plane 0: x=px@W, y=py@H ; plane 1: x=px@W, y=pz@H ; plane 2: x=py@W, y=pz@H
    px, py, pz = pts_flat[..., 0], pts_flat[..., 1], pts_flat[..., 2]
    fx_w = (px + 1.0) * (W * 0.5) - 0.5
    fy_w = (py + 1.0) * (W * 0.5) - 0.5
    fy_h = (py + 1.0) * (H * 0.5) - 0.5
    fz_h = (pz + 1.0) * (H * 0.5) - 0.5
    coords = jnp.stack([fx_w, fy_h,       # plane 0 (width, height)
                        fx_w, fz_h,       # plane 1
                        fy_w, fz_h],      # plane 2
                       axis=1)            # (B, 6, N)

    # pad the point axis to a multiple of the point tile with a far
    # out-of-range sentinel -> padded columns get exactly-zero hat weights.
    TN = tile_points
    assert TN % 128 == 0, "tile_points must be a multiple of 128"
    N_pad = ((N + TN - 1) // TN) * TN
    if N_pad != N:
        coords = jnp.pad(coords, ((0, 0), (0, 0), (0, N_pad - N)),
                         constant_values=-1e6)

    # features (B, 3, C, H, W) -> (B, 3, C*H, W): one plane slab per matmul,
    # C*H on sublanes so the stage-1 matmul output is (C*H, TN) lane-dense.
    feat_slab = features.reshape(B, 3, C * H, W).astype(compute_dtype)

    itemsize = jnp.dtype(compute_dtype).itemsize
    slab_bytes = 3 * C * H * W * itemsize
    # TODO(synk): beyond this the slab no longer comfortably fits VMEM (esp.
    # v7x, 64 MiB) -> stream the H*W axis or use the 4-tap gather rewrite.
    assert slab_bytes <= (32 << 20), (
        "triplane feature slab too large for the VMEM-resident kernel")

    g_bytes = C * H * TN * 4                      # stage-1 intermediate (x3, sequential)
    blk_bytes = 2 * (slab_bytes + 6 * TN * 4 + C * TN * 4)   # double-buffered blocks
    vmem_limit = int(min(100 << 20,
                         max(32 << 20, blk_bytes + 3 * g_bytes + (8 << 20))))

    grid = (B, N_pad // TN)
    kern = functools.partial(_triplane_sampler_kernel, C=C, H=H, W=W)

    out_t = pl.pallas_call(
        kern,
        out_shape=jax.ShapeDtypeStruct((B, C, N_pad), jnp.float32),
        grid_spec=pltpu.PrefetchScalarGridSpec(
            num_scalar_prefetch=0,
            grid=grid,
            in_specs=[
                # point coords: one tile per (b, n) step
                pl.BlockSpec((1, 6, TN), lambda b, n: (b, 0, n)),
                # feature slab: constant block index -> VMEM-resident per b
                pl.BlockSpec((1, 3, C * H, W), lambda b, n: (b, 0, 0, 0)),
            ],
            out_specs=pl.BlockSpec((1, C, TN), lambda b, n: (b, 0, n)),
        ),
        compiler_params=pltpu.CompilerParams(
            dimension_semantics=("parallel", "parallel"),
            vmem_limit_bytes=vmem_limit),
    )(coords, feat_slab)

    feats = jnp.transpose(out_t[:, :, :N], (0, 2, 1)).reshape(
        B, *spatial, P, C)
    return feats, mask.reshape(B, *spatial, P, 1)


# ----------------------------------------------------------------------------
# Pure-JAX reference (independent gather-based grid_sample) for verification
# ----------------------------------------------------------------------------
def ref_forward(origins, directions, lengths, features_nchw, world2local):
    B = origins.shape[0]
    spatial = origins.shape[1:-1]
    R = int(np.prod(spatial))
    P = lengths.shape[-1]
    C, H, W = features_nchw.shape[2], features_nchw.shape[3], features_nchw.shape[4]

    o = origins.reshape(B, R, 3)
    d = directions.reshape(B, R, 3)
    l = lengths.reshape(B, R, P)
    Rm = world2local[:, :3, :3]
    t = world2local[:, 3, :3]
    ol = jnp.einsum('brc,bcd->brd', o, Rm) + t[:, None, :]
    dl = jnp.einsum('brc,bcd->brd', d, Rm)
    pts = ol[:, :, None, :] + l[..., None] * dl[:, :, None, :]   # (B, R, P, 3)
    pts_flat = pts.reshape(B, R * P, 3)

    def sample_one(plane, gx, gy):
        # plane (C, H, W); gx, gy (N,) ; torch grid_sample bilinear, zeros pad
        fx = (gx + 1.0) * W / 2.0 - 0.5
        fy = (gy + 1.0) * H / 2.0 - 0.5
        x0 = jnp.floor(fx)
        y0 = jnp.floor(fy)
        wx1 = fx - x0
        wy1 = fy - y0

        def fetch(xi, yi):
            inb = ((xi >= 0) & (xi < W) & (yi >= 0) & (yi < H)).astype(plane.dtype)
            xi_c = jnp.clip(xi, 0, W - 1).astype(jnp.int32)
            yi_c = jnp.clip(yi, 0, H - 1).astype(jnp.int32)
            return plane[:, yi_c, xi_c] * inb                    # (C, N)

        out = (fetch(x0, y0) * (1 - wx1) * (1 - wy1)
               + fetch(x0 + 1, y0) * wx1 * (1 - wy1)
               + fetch(x0, y0 + 1) * (1 - wx1) * wy1
               + fetch(x0 + 1, y0 + 1) * wx1 * wy1)
        return out.T                                             # (N, C)

    feats = jnp.zeros((B, R, P, C), jnp.float32)
    for k, (dx_, dy_) in enumerate(((0, 1), (0, 2), (1, 2))):
        per_b = jax.vmap(sample_one)(features_nchw[:, k],
                                     pts_flat[:, :, dx_], pts_flat[:, :, dy_])
        feats = feats + per_b.reshape(B, R, P, C)

    mask = jnp.all((pts <= 1.0) & (pts >= -1.0), axis=-1, keepdims=True)
    return feats.reshape(B, *spatial, P, C), mask.reshape(B, *spatial, P, 1)


# ----------------------------------------------------------------------------
if __name__ == "__main__":
    key = jax.random.PRNGKey(0)
    k1, k2, k3, k4 = jax.random.split(key, 4)

    B, Hs, Ws, P = 2, 8, 8, 10       # batch, image spatial dims, points/ray
    C, H, W = 8, 16, 16              # triplane feature dim and plane resolution

    origins = jax.random.uniform(k1, (B, Hs, Ws, 3), jnp.float32, -0.3, 0.3)
    directions = jax.random.normal(k2, (B, Hs, Ws, 3), jnp.float32)
    directions = directions / jnp.linalg.norm(directions, axis=-1, keepdims=True)
    lengths = jnp.broadcast_to(
        jnp.linspace(0.05, 2.0, P, dtype=jnp.float32), (B, Hs, Ws, P))
    lengths = lengths + 0.01 * jax.random.uniform(k3, (B, Hs, Ws, P), jnp.float32)

    # deterministic "Triplanes" parameters: features + world->local transform
    features = jax.random.normal(k4, (B, 3, C, H, W), jnp.float32)
    w2l = np.zeros((B, 4, 4), dtype=np.float32)
    for b in range(B):
        s = np.array([0.8, 0.9, 1.1], np.float32) * (1.0 + 0.1 * b)
        w2l[b, 0, 0], w2l[b, 1, 1], w2l[b, 2, 2] = s
        w2l[b, 3, :3] = np.array([0.05, -0.1, 0.15], np.float32) * (b + 1)
        w2l[b, 3, 3] = 1.0
    w2l = jnp.asarray(w2l)

    feats, mask = masked_triplane_sampler(origins, directions, lengths,
                                          features, w2l)
    jax.block_until_ready((feats, mask))

    ref_feats, ref_mask = ref_forward(origins, directions, lengths, features, w2l)
    np.testing.assert_allclose(np.asarray(feats), np.asarray(ref_feats),
                               rtol=1e-4, atol=1e-4)
    np.testing.assert_array_equal(np.asarray(mask), np.asarray(ref_mask))

    print("KERNEL_OK")
</pallas_src>

<mosaic_0001>
module attributes {stable_mosaic.version = 11 : i64} {
  func.func @_triplane_sampler_kernel(%arg0: i32, %arg1: i32, %arg2: memref<1x6x512xf32, #tpu.memory_space<vmem>>, %arg3: memref<1x3x128x16xf32, #tpu.memory_space<vmem>>, %arg4: memref<1x8x512xf32, #tpu.memory_space<vmem>>) attributes {dimension_semantics = [#tpu.dimension_semantics<parallel>, #tpu.dimension_semantics<parallel>], iteration_bounds = array<i64: 2, 2>, scalar_prefetch = 0 : i64, scratch_operands = 0 : i64, tpu.core_type = #tpu.core_type<tc>, window_params = [{transform_indices = @transform_0, window_bounds = array<i64: 1, 6, 512>}, {transform_indices = @transform_1, window_bounds = array<i64: 1, 3, 128, 16>}, {transform_indices = @transform_2, window_bounds = array<i64: 1, 8, 512>}]} {
    %0 = tpu.iota {dimensions = array<i32: 0>} : vector<16x1xi32>
    %1 = arith.sitofp %0 : vector<16x1xi32> to vector<16x1xf32>
    %2 = tpu.iota {dimensions = array<i32: 0>} : vector<16x1xi32>
    %3 = arith.sitofp %2 : vector<16x1xi32> to vector<16x1xf32>
    %cst = arith.constant 0.000000e+00 : f32
    %4 = vector.broadcast %cst : f32 to vector<8x512xf32>
    %c0 = arith.constant 0 : index
    %c0_0 = arith.constant 0 : index
    %c0_1 = arith.constant 0 : index
    %5 = vector.load %arg2[%c0, %c0_0, %c0_1] : memref<1x6x512xf32, #tpu.memory_space<vmem>>, vector<1x1x512xf32>
    %6 = vector.shape_cast %5 : vector<1x1x512xf32> to vector<1x512xf32>
    %c0_2 = arith.constant 0 : index
    %c1 = arith.constant 1 : index
    %c0_3 = arith.constant 0 : index
    %7 = vector.load %arg2[%c0_2, %c1, %c0_3] : memref<1x6x512xf32, #tpu.memory_space<vmem>>, vector<1x1x512xf32>
    %8 = vector.shape_cast %7 : vector<1x1x512xf32> to vector<1x512xf32>
    %9 = vector.broadcast %6 : vector<1x512xf32> to vector<16x512xf32>
    %10 = vector.broadcast %1 : vector<16x1xf32> to vector<16x512xf32>
    %11 = arith.subf %9, %10 : vector<16x512xf32>
    %12 = math.absf %11 : vector<16x512xf32>
    %cst_4 = arith.constant 1.000000e+00 : f32
    %13 = vector.broadcast %cst_4 : f32 to vector<16x512xf32>
    %14 = arith.subf %13, %12 : vector<16x512xf32>
    %cst_5 = arith.constant 0.000000e+00 : f32
    %15 = vector.broadcast %cst_5 : f32 to vector<16x512xf32>
    %16 = arith.maximumf %14, %15 : vector<16x512xf32>
    %17 = vector.broadcast %8 : vector<1x512xf32> to vector<16x512xf32>
    %18 = vector.broadcast %3 : vector<16x1xf32> to vector<16x512xf32>
    %19 = arith.subf %17, %18 : vector<16x512xf32>
    %20 = math.absf %19 : vector<16x512xf32>
    %cst_6 = arith.constant 1.000000e+00 : f32
    %21 = vector.broadcast %cst_6 : f32 to vector<16x512xf32>
    %22 = arith.subf %21, %20 : vector<16x512xf32>
    %cst_7 = arith.constant 0.000000e+00 : f32
    %23 = vector.broadcast %cst_7 : f32 to vector<16x512xf32>
    %24 = arith.maximumf %22, %23 : vector<16x512xf32>
    %c0_8 = arith.constant 0 : index
    %c0_9 = arith.constant 0 : index
    %c0_10 = arith.constant 0 : index
    %c0_11 = arith.constant 0 : index
    %25 = vector.load %arg3[%c0_8, %c0_9, %c0_10, %c0_11] : memref<1x3x128x16xf32, #tpu.memory_space<vmem>>, vector<1x1x128x16xf32>
    %26 = vector.shape_cast %25 : vector<1x1x128x16xf32> to vector<128x16xf32>
    %cst_12 = arith.constant dense<0.000000e+00> : vector<128x512xf32>
    %27 = tpu.matmul %26, %16, %cst_12 {dimension_numbers = #tpu.dot_dimension_numbers<[1], [0], [0], [1], [0, 0, 1, 1], [], []>} : vector<128x16xf32>, vector<16x512xf32>, vector<128x512xf32> -> vector<128x512xf32>
    %28 = vector.shape_cast %27 : vector<128x512xf32> to vector<8x16x512xf32>
    %29 = vector.shape_cast %24 : vector<16x512xf32> to vector<1x16x512xf32>
    %30 = vector.broadcast %29 : vector<1x16x512xf32> to vector<8x16x512xf32>
    %31 = arith.mulf %28, %30 : vector<8x16x512xf32>
    %cst_13 = arith.constant dense<0.000000e+00> : vector<8x512xf32>
    %32 = vector.multi_reduction <add>, %31, %cst_13 [1] : vector<8x16x512xf32> to vector<8x512xf32>
    %33 = arith.addf %4, %32 : vector<8x512xf32>
    %c0_14 = arith.constant 0 : index
    %c2 = arith.constant 2 : index
    %c0_15 = arith.constant 0 : index
    %34 = vector.load %arg2[%c0_14, %c2, %c0_15] : memref<1x6x512xf32, #tpu.memory_space<vmem>>, vector<1x1x512xf32>
    %35 = vector.shape_cast %34 : vector<1x1x512xf32> to vector<1x512xf32>
    %c0_16 = arith.constant 0 : index
    %c3 = arith.constant 3 : index
    %c0_17 = arith.constant 0 : index
    %36 = vector.load %arg2[%c0_16, %c3, %c0_17] : memref<1x6x512xf32, #tpu.memory_space<vmem>>, vector<1x1x512xf32>
    %37 = vector.shape_cast %36 : vector<1x1x512xf32> to vector<1x512xf32>
    %38 = vector.broadcast %35 : vector<1x512xf32> to vector<16x512xf32>
    %39 = vector.broadcast %1 : vector<16x1xf32> to vector<16x512xf32>
    %40 = arith.subf %38, %39 : vector<16x512xf32>
    %41 = math.absf %40 : vector<16x512xf32>
    %cst_18 = arith.constant 1.000000e+00 : f32
    %42 = vector.broadcast %cst_18 : f32 to vector<16x512xf32>
    %43 = arith.subf %42, %41 : vector<16x512xf32>
    %cst_19 = arith.constant 0.000000e+00 : f32
    %44 = vector.broadcast %cst_19 : f32 to vector<16x512xf32>
    %45 = arith.maximumf %43, %44 : vector<16x512xf32>
    %46 = vector.broadcast %37 : vector<1x512xf32> to vector<16x512xf32>
    %47 = vector.broadcast %3 : vector<16x1xf32> to vector<16x512xf32>
    %48 = arith.subf %46, %47 : vector<16x512xf32>
    %49 = math.absf %48 : vector<16x512xf32>
    %cst_20 = arith.constant 1.000000e+00 : f32
    %50 = vector.broadcast %cst_20 : f32 to vector<16x512xf32>
    %51 = arith.subf %50, %49 : vector<16x512xf32>
    %cst_21 = arith.constant 0.000000e+00 : f32
    %52 = vector.broadcast %cst_21 : f32 to vector<16x512xf32>
    %53 = arith.maximumf %51, %52 : vector<16x512xf32>
    %c0_22 = arith.constant 0 : index
    %c1_23 = arith.constant 1 : index
    %c0_24 = arith.constant 0 : index
    %c0_25 = arith.constant 0 : index
    %54 = vector.load %arg3[%c0_22, %c1_23, %c0_24, %c0_25] : memref<1x3x128x16xf32, #tpu.memory_space<vmem>>, vector<1x1x128x16xf32>
    %55 = vector.shape_cast %54 : vector<1x1x128x16xf32> to vector<128x16xf32>
    %cst_26 = arith.constant dense<0.000000e+00> : vector<128x512xf32>
    %56 = tpu.matmul %55, %45, %cst_26 {dimension_numbers = #tpu.dot_dimension_numbers<[1], [0], [0], [1], [0, 0, 1, 1], [], []>} : vector<128x16xf32>, vector<16x512xf32>, vector<128x512xf32> -> vector<128x512xf32>
    %57 = vector.shape_cast %56 : vector<128x512xf32> to vector<8x16x512xf32>
    %58 = vector.shape_cast %53 : vector<16x512xf32> to vector<1x16x512xf32>
    %59 = vector.broadcast %58 : vector<1x16x512xf32> to vector<8x16x512xf32>
    %60 = arith.mulf %57, %59 : vector<8x16x512xf32>
    %cst_27 = arith.constant dense<0.000000e+00> : vector<8x512xf32>
    %61 = vector.multi_reduction <add>, %60, %cst_27 [1] : vector<8x16x512xf32> to vector<8x512xf32>
    %62 = arith.addf %33, %61 : vector<8x512xf32>
    %c0_28 = arith.constant 0 : index
    %c4 = arith.constant 4 : index
    %c0_29 = arith.constant 0 : index
    %63 = vector.load %arg2[%c0_28, %c4, %c0_29] : memref<1x6x512xf32, #tpu.memory_space<vmem>>, vector<1x1x512xf32>
    %64 = vector.shape_cast %63 : vector<1x1x512xf32> to vector<1x512xf32>
    %c0_30 = arith.constant 0 : index
    %c5 = arith.constant 5 : index
    %c0_31 = arith.constant 0 : index
    %65 = vector.load %arg2[%c0_30, %c5, %c0_31] : memref<1x6x512xf32, #tpu.memory_space<vmem>>, vector<1x1x512xf32>
    %66 = vector.shape_cast %65 : vector<1x1x512xf32> to vector<1x512xf32>
    %67 = vector.broadcast %64 : vector<1x512xf32> to vector<16x512xf32>
    %68 = vector.broadcast %1 : vector<16x1xf32> to vector<16x512xf32>
    %69 = arith.subf %67, %68 : vector<16x512xf32>
    %70 = math.absf %69 : vector<16x512xf32>
    %cst_32 = arith.constant 1.000000e+00 : f32
    %71 = vector.broadcast %cst_32 : f32 to vector<16x512xf32>
    %72 = arith.subf %71, %70 : vector<16x512xf32>
    %cst_33 = arith.constant 0.000000e+00 : f32
    %73 = vector.broadcast %cst_33 : f32 to vector<16x512xf32>
    %74 = arith.maximumf %72, %73 : vector<16x512xf32>
    %75 = vector.broadcast %66 : vector<1x512xf32> to vector<16x512xf32>
    %76 = vector.broadcast %3 : vector<16x1xf32> to vector<16x512xf32>
    %77 = arith.subf %75, %76 : vector<16x512xf32>
    %78 = math.absf %77 : vector<16x512xf32>
    %cst_34 = arith.constant 1.000000e+00 : f32
    %79 = vector.broadcast %cst_34 : f32 to vector<16x512xf32>
    %80 = arith.subf %79, %78 : vector<16x512xf32>
    %cst_35 = arith.constant 0.000000e+00 : f32
    %81 = vector.broadcast %cst_35 : f32 to vector<16x512xf32>
    %82 = arith.maximumf %80, %81 : vector<16x512xf32>
    %c0_36 = arith.constant 0 : index
    %c2_37 = arith.constant 2 : index
    %c0_38 = arith.constant 0 : index
    %c0_39 = arith.constant 0 : index
    %83 = vector.load %arg3[%c0_36, %c2_37, %c0_38, %c0_39] : memref<1x3x128x16xf32, #tpu.memory_space<vmem>>, vector<1x1x128x16xf32>
    %84 = vector.shape_cast %83 : vector<1x1x128x16xf32> to vector<128x16xf32>
    %cst_40 = arith.constant dense<0.000000e+00> : vector<128x512xf32>
    %85 = tpu.matmul %84, %74, %cst_40 {dimension_numbers = #tpu.dot_dimension_numbers<[1], [0], [0], [1], [0, 0, 1, 1], [], []>} : vector<128x16xf32>, vector<16x512xf32>, vector<128x512xf32> -> vector<128x512xf32>
    %86 = vector.shape_cast %85 : vector<128x512xf32> to vector<8x16x512xf32>
    %87 = vector.shape_cast %82 : vector<16x512xf32> to vector<1x16x512xf32>
    %88 = vector.broadcast %87 : vector<1x16x512xf32> to vector<8x16x512xf32>
    %89 = arith.mulf %86, %88 : vector<8x16x512xf32>
    %cst_41 = arith.constant dense<0.000000e+00> : vector<8x512xf32>
    %90 = vector.multi_reduction <add>, %89, %cst_41 [1] : vector<8x16x512xf32> to vector<8x512xf32>
    %91 = arith.addf %62, %90 : vector<8x512xf32>
    %c0_42 = arith.constant 0 : index
    %c0_43 = arith.constant 0 : index
    %c0_44 = arith.constant 0 : index
    %92 = vector.load %arg4[%c0_42, %c0_43, %c0_44] : memref<1x8x512xf32, #tpu.memory_space<vmem>>, vector<1x8x512xf32>
    %93 = vector.shape_cast %92 : vector<1x8x512xf32> to vector<8x512xf32>
    %94 = vector.shape_cast %91 : vector<8x512xf32> to vector<1x8x512xf32>
    tpu.vector_store %arg4[%c0_42, %c0_43, %c0_44], %94 {strides = array<i32>} : memref<1x8x512xf32, #tpu.memory_space<vmem>>, vector<1x8x512xf32>,
    return
  }
  func.func @transform_0(%arg0: i32, %arg1: i32) -> (i32, i32, i32) {
    %c0_i32 = arith.constant 0 : i32
    %c0_i32_0 = arith.constant 0 : i32
    return %arg0, %c0_i32, %arg1 : i32, i32, i32
  }
  func.func @transform_1(%arg0: i32, %arg1: i32) -> (i32, i32, i32, i32) {
    %c0_i32 = arith.constant 0 : i32
    %c0_i32_0 = arith.constant 0 : i32
    %c0_i32_1 = arith.constant 0 : i32
    %c0_i32_2 = arith.constant 0 : i32
    return %arg0, %c0_i32, %c0_i32_0, %c0_i32_1 : i32, i32, i32, i32
  }
  func.func @transform_2(%arg0: i32, %arg1: i32) -> (i32, i32, i32) {
    %c0_i32 = arith.constant 0 : i32
    %c0_i32_0 = arith.constant 0 : i32
    return %arg0, %c0_i32, %arg1 : i32, i32, i32
  }
}

</mosaic_0001>

<bundles_post_ra>
// kernel: tpu_custom_call.1
= control target key start
LH: loop header
LB: loop body
LE: loop exit
PB: predicated region body
PF: predicated region fallthrough
CT: control target
= control target key end

     0   :  { %7 = vsyncpa [#allocation3], 0  ;;  %s4474_s0 = inlined_call_operand.vmem [shape: f32[2,6,1024], index: 0, kind: input, shape index: {}]   ;;  %s4475_s1 = inlined_call_operand.vmem [shape: f32[2,3,128,16], index: 1, kind: input, shape index: {}]   ;;  %s4476_s2 = inlined_call_operand.hbm [shape: f32[2,8,1024], index: 2, kind: output, shape index: {}]  }
   0x1   :  { %9 = vsyncpa [#allocation3 + $0x1], 0  ;;  %s3165_s9 = smov 0   ;;  %s3167_s10 = smov 0  }
   0x2   :  { %s3169_s11 = smov 0   ;;  %s3171_s12 = smov 0  }
   0x3   :  { %s3173_s13 = smov 0   ;;  %s3175_s14 = smov 0  }
   0x4   :  { %s3177_s15 = smov 0   ;;  %s3179_s16 = smov 0  }
   0x5 LB: > { %s2831_s17 = sadd.s32 4294967295, %s3146_s16   ;;  %s2832_s18 = sadd.s32 4294967294, %s3146_s16   ;;  %s3146_s16 = sphi %s3179_s16, %s15_s16   ;;  %s3142_s15 = sphi %s3177_s15, %s4605_s15   ;;  %s3138_s14 = sphi %s3175_s14, %s4604_s14   ;;  %s3134_s13 = sphi %s3173_s13, %s4603_s13   ;;  %s3130_s12 = sphi %s3171_s12, %s4602_s12   ;;  %s3126_s11 = sphi %s3169_s11, %s4601_s11   ;;  %s3122_s10 = sphi %s3167_s10, %s4600_s10   ;;  %s3118_s9 = sphi %s3165_s9, %s4599_s9  }
   0x6   : > { %s24_s19 = sadd.s32 1, %s3138_s14  ;;  %s27_s20 = sadd.s32 1, %s3142_s15 }
   0x7   : > { %p25_p0 = scmp.ge.s32.totalorder %s24_s19, 2  ;;  %p100_p1 = scmp.ne.s32.totalorder %s3126_s11, %s3122_s10 }
   0x8   : > { %p101_p2 = scmp.eq.s32.totalorder %s2831_s17, 3  ;;  %p106_p5 = scmp.ne.s32.totalorder %s3122_s10, %s3118_s9 }
   0x9   : > { %s4607_s19 = smov (%p25_p0, %s24_s19), 0  ;;  %s4609_s20 = smov (!%p25_p0, %s27_s20), %s3142_s15 }
   0xa   : > { %s86_s21 = ssub.s32 %s3138_s14, %s4607_s19  ;;  %p3216_p3 = por %p101_p2, %p100_p1 }
   0xb   : > { %p29_p4 = scmp.ge.s32.totalorder %s4609_s20, 2  ;;  %p107_p6 = scmp.eq.s32.totalorder %s2832_s18, 3 }
   0xc   : > { %p2835_p7 = scmp.ge.s32.totalorder %s3146_s16, 1  ;;  %p146_p9 = scmp.lt.s32.totalorder %s3146_s16, 5 }
   0xd   : > { %s4611_s20 = smov (%p29_p4, %s4609_s20), 0  ;;  %p3225_p8 = por %p107_p6, %p106_p5 }
   0xe   : > { %s85_s24 = ssub.s32 %s3142_s15, %s4611_s20  ;;  %s90_s25 = sadd.s32 1, %s3126_s11 }
   0xf   : > { %s87_s26 = sor.u32 %s86_s21, %s85_s24  ;;  %p147_p10 = pnand %p2835_p7, %p146_p9 }
  0x10   : > { %p88_p11 = scmp.eq.s32.totalorder %s87_s26, 0 }
  0x11   : > { %150 = sbr.rel (%p147_p10) target bundleno = 512 (0x200), region = 28 }
  0x12   : > { %s3234_s27 = scalar_select %p88_p11, %s3126_s11, %s90_s25  }
  0x16   : > { %s3237_s28 = sshll.u32 %s3130_s12, 2  ;;  %p178_p12 = scmp.lt.s32.totalorder %s3134_s13, 1  ;;  %v193_v0 = vlaneseq  ;;  %v3148_v1 = vmov 0.0   ;;  %vm323_vm0 = vcmask 130048   ;;  %vm2680_vm1 = vcmask 1041409  }
  0x17   : > { %p180_p13 = scmp.lt.s32.totalorder %s3237_s28, 7  ;;  %436 = vmatprep.mubr.f32.mxu0 %v3148_v1  ;;  %597 = vmatprep.mubr.f32.mxu1 %v3148_v1  ;;  %vm2682_vm2 = vcmask 1042434   ;;  %vm2684_vm3 = vcmask 1043459   ;;  %vm2686_vm4 = vcmask 1044484   ;;  %vm2688_vm5 = vcmask 1045509   ;;  %s174_s24 = sand.u32 1, %s3122_s10  }
  0x18   : > { %s3244_s29 = scalar_select %p178_p12, %s3134_s13, 1  ;;  %v194_v2 = vshrl.u32 %v193_v0, 7  ;;  %vm2690_vm6 = vcmask 1046534   ;;  %vm2692_vm7 = vcmask 1047559  }
  0x19   : > { %s181_s30 = scalar_select %p180_p13, %s3237_s28, 7 }
  0x1a   : > { %s2838_s3 = sshll.u32 %s3244_s29, 3  ;;  %v195_v3 = vadd.s32 8, %v194_v2  ;;  %v3248_v4 = vsub.s32 1, %v194_v2  ;;  %v3250_v5 = vsub.s32 3, %v194_v2  ;;  %v3252_v6 = vsub.s32 0, %v194_v2  ;;  %s2980_s12 = smul.u32 384, %s3244_s29 }
  0x1b   : > { %s183_s4 = sadd.s32 %s2838_s3, %s181_s30  ;;  %v3254_v7 = vsub.s32 2, %v194_v2  ;;  %v3263_v9 = vcvt.s32.f32 %v194_v2  ;;  %s2836_s25 = sshll.u32 %s174_s24, 5 }
  0x1c   : > { %4487 = vst [vmem:[#allocation5_spill] sm:$0xff] %v3248_v4  ;;  %4488 = vst [vmem:[#allocation6_spill] sm:$0xff] %v3250_v5  ;;  %s2839_s5 = sshll.u32 %s183_s4, 3  ;;  %v3261_v8 = vcvt.s32.f32 %v195_v3  ;;  %s3293_s21 = scalar_lea.vmem %s4475_s1, %s2980_s12 }
  0x1d   : > { %4489 = vst [vmem:[#allocation7_spill] sm:$0xff] %v3254_v7  ;;  %s3259_s8 = scalar_lea.vmem %s4474_s0, %s2839_s5  ;;  %4491 = vst [vmem:[#allocation9_spill] sm:$0xff] %v3263_v9  ;;  %v307_v57 = vld [vmem:[%s3293_s21] sm:$0xff]  ;;  %s2976_s26 = sshll.u32 %s3134_s13, 3 }
  0x1e   : > { %4490 = vst [vmem:[#allocation8_spill] sm:$0xff] %v3261_v8  ;;  %v198_v10 = vld [vmem:[%s3259_s8] ss:$8 sm:$0xf]  ;;  %s2736_s29 = sadd.s32 %s2976_s26, %s3237_s28  ;;  %s176_s28 = scalar_lea.vmem [#allocation2], %s2836_s25 }
  0x1f   : > { %v2874_v11 = vld [vmem:[%s3259_s8 + $0x2] ss:$8 sm:$0xf]  ;;  %v209_v12 = vrot.slane %v198_v10, %v3248_v4  ;;  %v217_v13 = vrot.slane %v198_v10, %v3250_v5  ;;  %v205_v14 = vrot.slane %v198_v10, %v3252_v6  ;;  %v213_v15 = vrot.slane %v198_v10, %v3254_v7  ;;  %v3303_v61 = vld [vmem:[%s3259_s8 + $0x4] ss:$8 sm:$0xf] }
  0x20   : > { %v1026_v16 = vrot.slane %v2874_v11, %v3248_v4  ;;  %v1034_v17 = vrot.slane %v2874_v11, %v3250_v5  ;;  %v3274_v18 = vrot.slane %v2874_v11, %v3252_v6  ;;  %v3277_v19 = vrot.slane %v2874_v11, %v3254_v7  ;;  %s2977_s13 = sshll.u32 %s2736_s29, 7  ;;  %s2740_s30 = sshll.u32 %s176_s28, 4  ;;  %s4421_s30 = int_to_ptr.vmem [resolvable:$true] %s2740_s30 }
  0x21   : > { %v227_v20 = vsub.f32 %v209_v12, %v3261_v8  ;;  %v229_v21 = vsub.f32 %v217_v13, %v3261_v8  ;;  %v226_v22 = vsub.f32 %v205_v14, %v3261_v8  ;;  %v228_v23 = vsub.f32 %v213_v15, %v3261_v8  ;;  %s4419_s5 = scalar_lea.hbm %s4476_s2, %s2977_s13  ;;  %s2724_s6 = scalar_lea.sflag [#allocation3], %s174_s24 }
  0x22   : > { %v223_v24 = vsub.f32 %v209_v12, %v3263_v9  ;;  %v225_v25 = vsub.f32 %v217_v13, %v3263_v9  ;;  %v222_v26 = vsub.f32 %v205_v14, %v3263_v9  ;;  %v224_v27 = vsub.f32 %v213_v15, %v3263_v9  ;;  %s3054_s7 = scalar_lea.vmem %s4421_s30, 512 }
  0x23   : > { %v235_v28 = vand.u32 2147483647, %v227_v20  ;;  %v237_v29 = vand.u32 2147483647, %v229_v21  ;;  %v234_v30 = vand.u32 2147483647, %v226_v22  ;;  %v1044_v31 = vsub.f32 %v1026_v16, %v3261_v8  ;;  %p3055_p0 = scmp.ne.s32.totalorder %s4421_s30, %s3054_s7 }
  0x24   : > { %v236_v32 = vand.u32 2147483647, %v228_v23  ;;  %v231_v33 = vand.u32 2147483647, %v223_v24  ;;  %v233_v34 = vand.u32 2147483647, %v225_v25  ;;  %v1046_v35 = vsub.f32 %v1034_v17, %v3261_v8 }
  0x25   : > { %v243_v36 = vsub.f32 1.0, %v235_v28  ;;  %v245_v37 = vsub.f32 1.0, %v237_v29  ;;  %v242_v38 = vsub.f32 1.0, %v234_v30  ;;  %v230_v39 = vand.u32 2147483647, %v222_v26  ;;  %p3056_p1 = pnand %p3055_p0, %p3216_p3 }
  0x26   : > { %v244_v40 = vsub.f32 1.0, %v236_v32  ;;  %v239_v41 = vsub.f32 1.0, %v231_v33  ;;  %v241_v42 = vsub.f32 1.0, %v233_v34  ;;  %v232_v43 = vand.u32 2147483647, %v224_v27  ;;  %v309_v33 = vld [vmem:[%s3293_s21 + $0x10] sm:$0xff] }
  0x27   : > { %v251_v44 = vmax.f32 %v243_v36, 0.0  ;;  %v253_v45 = vmax.f32 %v245_v37, 0.0  ;;  %v250_v46 = vmax.f32 %v242_v38, 0.0  ;;  %v238_v47 = vsub.f32 1.0, %v230_v39  ;;  %v310_v39 = vld [vmem:[%s3293_s21 + $0x18] sm:$0xff]  ;;  %p3057_p2 = pneg %p3056_p1 }
  0x28   : > { %v252_v48 = vmax.f32 %v244_v40, 0.0  ;;  %v247_v49 = vmax.f32 %v239_v41, 0.0  ;;  %v249_v50 = vmax.f32 %v241_v42, 0.0  ;;  %v240_v51 = vsub.f32 1.0, %v232_v43  ;;  %v311_v42 = vld [vmem:[%s3293_s21 + $0x20] sm:$0xff]  ;;  %v312_v43 = vld [vmem:[%s3293_s21 + $0x28] sm:$0xff] }
  0x29   : > { %400 = vmatprep.subr.mxu0 %v251_v44  ;;  %561 = vmatprep.subr.mxu1 %v253_v45  ;;  %v246_v52 = vmax.f32 %v238_v47, 0.0  ;;  %v1052_v53 = vand.u32 2147483647, %v1044_v31  ;;  %v1054_v54 = vand.u32 2147483647, %v1046_v35  ;;  %v1043_v55 = vsub.f32 %v3274_v18, %v3261_v8  ;;  %v313_v44 = vld [vmem:[%s3293_s21 + $0x30] sm:$0xff] }
  0x2a   : > { %401 = vmatpush1.msra.mxu0 %v250_v46  ;;  %562 = vmatpush1.msra.mxu1 %v252_v48  ;;  %v248_v56 = vmax.f32 %v240_v51, 0.0  ;;  %v1045_v58 = vsub.f32 %v3277_v19, %v3261_v8  ;;  %v1040_v59 = vsub.f32 %v1026_v16, %v3263_v9  ;;  %v1042_v60 = vsub.f32 %v1034_v17, %v3263_v9  ;;  %v314_v45 = vld [vmem:[%s3293_s21 + $0x38] sm:$0xff]  ;;  %v315_v46 = vld [vmem:[%s3293_s21 + $0x40] sm:$0xff]  ;;  %v316_v47 = vld [vmem:[%s3293_s21 + $0x48] sm:$0xff] }
  0x2b   : > { %402 = vmatprep.subr.mxu0 %v247_v49  ;;  %563 = vmatprep.subr.mxu1 %v249_v50  ;;  %v1060_v62 = vsub.f32 1.0, %v1052_v53  ;;  %v1062_v63 = vsub.f32 1.0, %v1054_v54  ;;  %v1051_v0 = vand.u32 2147483647, %v1043_v55  ;;  %v1039_v2 = vsub.f32 %v3274_v18, %v3263_v9  ;;  %v308_v18 = vld [vmem:[%s3293_s21 + $0x8] sm:$0xff]  ;;  %v317_v48 = vld [vmem:[%s3293_s21 + $0x50] sm:$0xff] }
  0x2c   : > { %403 = vmatpush1.msra.mxu0 %v246_v52  ;;  %564 = vmatpush1.msra.mxu1 %v248_v56  ;;  %v1053_v3 = vand.u32 2147483647, %v1045_v58  ;;  %v1048_v10 = vand.u32 2147483647, %v1040_v59  ;;  %v1050_v11 = vand.u32 2147483647, %v1042_v60  ;;  %v1041_v12 = vsub.f32 %v3277_v19, %v3263_v9 }
  0x2d   : > { %2842 = vmatmul.mubr.msk.f32.vlgmr.msra.gmra.mxu0 %vm323_vm0, %v307_v57  ;;  %2858 = vmatmul.mubr.msk.f32.vlgmr.msra.gmra.mxu1 %vm323_vm0, %v307_v57  ;;  %v1068_v13 = vmax.f32 %v1060_v62, 0.0  ;;  %v1070_v14 = vmax.f32 %v1062_v63, 0.0  ;;  %v1059_v15 = vsub.f32 1.0, %v1051_v0  ;;  %v1047_v16 = vand.u32 2147483647, %v1039_v2  ;;  %v318_v49 = vld [vmem:[%s3293_s21 + $0x58] sm:$0xff] }
  0x2e   : > { %v1061_v17 = vsub.f32 1.0, %v1053_v3  ;;  %442 = vmatprep.mubr.f32.mxu0 %v3148_v1  ;;  %603 = vmatprep.mubr.f32.mxu1 %v3148_v1  ;;  %v1056_v20 = vsub.f32 1.0, %v1048_v10  ;;  %v1058_v21 = vsub.f32 1.0, %v1050_v11  ;;  %v1049_v22 = vand.u32 2147483647, %v1041_v12  ;;  %v319_v50 = vld [vmem:[%s3293_s21 + $0x60] sm:$0xff] }
  0x2f   : > { %1217 = vmatprep.subr.mxu0 %v1068_v13  ;;  %1378 = vmatprep.subr.mxu1 %v1070_v14  ;;  %v1067_v19 = vmax.f32 %v1059_v15, 0.0  ;;  %v1055_v23 = vsub.f32 1.0, %v1047_v16  ;;  %v3316_v24 = vrot.slane %v3303_v61, %v3248_v4  ;;  %v3320_v25 = vrot.slane %v3303_v61, %v3250_v5  ;;  %v320_v53 = vld [vmem:[%s3293_s21 + $0x68] sm:$0xff]  ;;  %v321_v58 = vld [vmem:[%s3293_s21 + $0x70] sm:$0xff]  ;;  %v322_v2 = vld [vmem:[%s3293_s21 + $0x78] sm:$0xff] }
  0x30   : > { %v1069_v26 = vmax.f32 %v1061_v17, 0.0  ;;  %v1064_v27 = vmax.f32 %v1056_v20, 0.0  ;;  %v1066_v28 = vmax.f32 %v1058_v21, 0.0  ;;  %v1057_v29 = vsub.f32 1.0, %v1049_v22  ;;  %v2876_v15 = vld [vmem:[%s3293_s21 + $0x80] sm:$0xff] }
  0x31   : > { %1218 = vmatpush1.msra.mxu0 %v1067_v19  ;;  %2859 = vmatmul.mubr.msk.f32.gmra.mxu1 %vm323_vm0, %v308_v18  ;;  %v1063_v30 = vmax.f32 %v1055_v23, 0.0  ;;  %v1861_v31 = vsub.f32 %v3316_v24, %v3261_v8  ;;  %v1863_v32 = vsub.f32 %v3320_v25, %v3261_v8  ;;  %v1847_v51 = vrot.slane %v3303_v61, %v3254_v7  ;;  %v2877_v19 = vld [vmem:[%s3293_s21 + $0x88] sm:$0xff] }
  0x32   : > { %1379 = vmatpush1.msra.mxu1 %v1069_v26  ;;  %2843 = vmatmul.mubr.msk.f32.gmra.mxu0 %vm323_vm0, %v308_v18  ;;  %v1065_v34 = vmax.f32 %v1057_v29, 0.0  ;;  %v1839_v52 = vrot.slane %v3303_v61, %v3252_v6  ;;  %v1857_v56 = vsub.f32 %v3316_v24, %v3263_v9  ;;  %v1859_v57 = vsub.f32 %v3320_v25, %v3263_v9  ;;  %v2878_v25 = vld [vmem:[%s3293_s21 + $0x90] sm:$0xff]  ;;  %v2879_v26 = vld [vmem:[%s3293_s21 + $0x98] sm:$0xff] }
  0x33   : > { %448 = vmatprep.mubr.f32.mxu0 %v3148_v1  ;;  %609 = vmatprep.mubr.f32.mxu1 %v3148_v1  ;;  %v1869_v35 = vand.u32 2147483647, %v1861_v31  ;;  %v1871_v36 = vand.u32 2147483647, %v1863_v32  ;;  %v1862_v54 = vsub.f32 %v1847_v51, %v3261_v8  ;;  %v1858_v63 = vsub.f32 %v1847_v51, %v3263_v9  ;;  %v2882_v29 = vld [vmem:[%s3293_s21 + $0xb0] sm:$0xff]  ;;  %v2884_v31 = vld [vmem:[%s3293_s21 + $0xc0] sm:$0xff] }
  0x34   : > { %1219 = vmatprep.subr.mxu0 %v1064_v27  ;;  %1380 = vmatprep.subr.mxu1 %v1066_v28  ;;  %v1860_v55 = vsub.f32 %v1839_v52, %v3261_v8  ;;  %v1856_v61 = vsub.f32 %v1839_v52, %v3263_v9  ;;  %v1865_v62 = vand.u32 2147483647, %v1857_v56  ;;  %v1867_v0 = vand.u32 2147483647, %v1859_v57  ;;  %v2880_v27 = vld [vmem:[%s3293_s21 + $0xa0] sm:$0xff]  ;;  %v2881_v28 = vld [vmem:[%s3293_s21 + $0xa8] sm:$0xff] }
  0x35   : > { %2860 = vmatmul.mubr.msk.f32.gmra.mxu1 %vm323_vm0, %v309_v33  ;;  %1220 = vmatpush1.msra.mxu0 %v1063_v30  ;;  %v1877_v37 = vsub.f32 1.0, %v1869_v35  ;;  %v1879_v38 = vsub.f32 1.0, %v1871_v36  ;;  %v1870_v59 = vand.u32 2147483647, %v1862_v54  ;;  %v1866_v13 = vand.u32 2147483647, %v1858_v63 }
  0x36   : > { %2844 = vmatmul.mubr.msk.f32.gmra.mxu0 %vm323_vm0, %v309_v33  ;;  %615 = vmatprep.mubr.f32.mxu1 %v3148_v1  ;;  %v1868_v60 = vand.u32 2147483647, %v1860_v55  ;;  %v1864_v11 = vand.u32 2147483647, %v1856_v61  ;;  %v1873_v12 = vsub.f32 1.0, %v1865_v62  ;;  %v1875_v14 = vsub.f32 1.0, %v1867_v0 }
  0x37   : > { %454 = vmatprep.mubr.f32.mxu0 %v3148_v1  ;;  %1381 = vmatpush1.msra.mxu1 %v1065_v34  ;;  %v1885_v40 = vmax.f32 %v1877_v37, 0.0  ;;  %v1887_v41 = vmax.f32 %v1879_v38, 0.0  ;;  %v1878_v3 = vsub.f32 1.0, %v1870_v59  ;;  %v1874_v21 = vsub.f32 1.0, %v1866_v13  ;;  %v2883_v30 = vld [vmem:[%s3293_s21 + $0xb8] sm:$0xff]  ;;  %v2885_v32 = vld [vmem:[%s3293_s21 + $0xc8] sm:$0xff] }
  0x38   : > { %v1876_v10 = vsub.f32 1.0, %v1868_v60  ;;  %v1872_v18 = vsub.f32 1.0, %v1864_v11  ;;  %v1881_v20 = vmax.f32 %v1873_v12, 0.0  ;;  %v1883_v22 = vmax.f32 %v1875_v14, 0.0  ;;  %v2886_v33 = vld [vmem:[%s3293_s21 + $0xd0] sm:$0xff]  ;;  %v2887_v34 = vld [vmem:[%s3293_s21 + $0xd8] sm:$0xff] }
  0x39   : > { %2861 = vmatmul.mubr.msk.f32.gmra.mxu1 %vm323_vm0, %v310_v39  ;;  %2034 = vmatprep.subr.mxu0 %v1885_v40  ;;  %v1886_v16 = vmax.f32 %v1878_v3, 0.0  ;;  %v1882_v24 = vmax.f32 %v1874_v21, 0.0  ;;  %v2888_v35 = vld [vmem:[%s3293_s21 + $0xe0] sm:$0xff]  ;;  %v2889_v36 = vld [vmem:[%s3293_s21 + $0xe8] sm:$0xff]  ;;  %v2890_v37 = vld [vmem:[%s3293_s21 + $0xf0] sm:$0xff] }
  0x3a   : > { %2845 = vmatmul.mubr.msk.f32.gmra.mxu0 %vm323_vm0, %v310_v39  ;;  %621 = vmatprep.mubr.f32.mxu1 %v3148_v1  ;;  %v1884_v17 = vmax.f32 %v1876_v10, 0.0  ;;  %v1880_v23 = vmax.f32 %v1872_v18, 0.0  ;;  %v2891_v38 = vld [vmem:[%s3293_s21 + $0xf8] sm:$0xff]  ;;  %v2926_v39 = vld [vmem:[%s3293_s21 + $0x100] sm:$0xff]  ;;  %v2927_v40 = vld [vmem:[%s3293_s21 + $0x108] sm:$0xff] }
  0x3b   : > { %460 = vmatprep.mubr.f32.mxu0 %v3148_v1  ;;  %2195 = vmatprep.subr.mxu1 %v1887_v41  ;;  %v2928_v41 = vld [vmem:[%s3293_s21 + $0x110] sm:$0xff]  ;;  %v2938_v51 = vld [vmem:[%s3293_s21 + $0x160] sm:$0xff] }
  0x3c   : > { %v2841_v52 = vld [vmem:[%s3259_s8 + $0x1] ss:$8 sm:$0xf]  ;;  %v2875_v55 = vld [vmem:[%s3259_s8 + $0x3] ss:$8 sm:$0xf] }
  0x3d   : > { %2862 = vmatmul.mubr.msk.f32.gmra.mxu1 %vm323_vm0, %v311_v42  ;;  %v266_v54 = vrot.slane %v2841_v52, %v3254_v7  ;;  %v258_v56 = vrot.slane %v2841_v52, %v3252_v6  ;;  %v262_v57 = vrot.slane %v2841_v52, %v3248_v4  ;;  %v1075_v59 = vrot.slane %v2875_v55, %v3252_v6  ;;  %v2940_v61 = vld [vmem:[%s3293_s21 + $0x170] sm:$0xff] }
  0x3e   : > { %2846 = vmatmul.mubr.msk.f32.gmra.mxu0 %vm323_vm0, %v311_v42  ;;  %627 = vmatprep.mubr.f32.mxu1 %v3148_v1  ;;  %v2929_v42 = vld [vmem:[%s3293_s21 + $0x118] sm:$0xff]  ;;  %v1083_v60 = vrot.slane %v2875_v55, %v3254_v7 }
  0x3f   : > { %466 = vmatprep.mubr.f32.mxu0 %v3148_v1  ;;  %v277_v62 = vsub.f32 %v266_v54, %v3263_v9  ;;  %v281_v63 = vsub.f32 %v266_v54, %v3261_v8  ;;  %v275_v0 = vsub.f32 %v258_v56, %v3263_v9  ;;  %v276_v3 = vsub.f32 %v262_v57, %v3263_v9 }
  0x40   : > { %v280_v12 = vsub.f32 %v262_v57, %v3261_v8  ;;  %v1092_v13 = vsub.f32 %v1075_v59, %v3263_v9  ;;  %v1094_v14 = vsub.f32 %v1083_v60, %v3263_v9 }
  0x41   : > { %2863 = vmatmul.mubr.msk.f32.gmra.mxu1 %vm323_vm0, %v312_v43  ;;  %v289_v18 = vand.u32 2147483647, %v281_v63  ;;  %v283_v21 = vand.u32 2147483647, %v275_v0 }
  0x42   : > { %2847 = vmatmul.mubr.msk.f32.gmra.mxu0 %vm323_vm0, %v312_v43  ;;  %633 = vmatprep.mubr.f32.mxu1 %v3148_v1  ;;  %v2930_v43 = vld [vmem:[%s3293_s21 + $0x120] sm:$0xff] }
  0x43   : > { %472 = vmatprep.mubr.f32.mxu0 %v3148_v1 }
  0x45   : > { %2864 = vmatmul.mubr.msk.f32.gmra.mxu1 %vm323_vm0, %v313_v44 }
  0x46   : > { %2848 = vmatmul.mubr.msk.f32.gmra.mxu0 %vm323_vm0, %v313_v44  ;;  %639 = vmatprep.mubr.f32.mxu1 %v3148_v1  ;;  %v2931_v44 = vld [vmem:[%s3293_s21 + $0x128] sm:$0xff] }
  0x47   : > { %478 = vmatprep.mubr.f32.mxu0 %v3148_v1 }
  0x49   : > { %2865 = vmatmul.mubr.msk.f32.gmra.mxu1 %vm323_vm0, %v314_v45 }
  0x4a   : > { %2849 = vmatmul.mubr.msk.f32.gmra.mxu0 %vm323_vm0, %v314_v45  ;;  %645 = vmatprep.mubr.f32.mxu1 %v3148_v1  ;;  %v2932_v45 = vld [vmem:[%s3293_s21 + $0x130] sm:$0xff] }
  0x4b   : > { %484 = vmatprep.mubr.f32.mxu0 %v3148_v1 }
  0x4d   : > { %2866 = vmatmul.mubr.msk.f32.gmra.mxu1 %vm323_vm0, %v315_v46 }
  0x4e   : > { %2850 = vmatmul.mubr.msk.f32.gmra.mxu0 %vm323_vm0, %v315_v46  ;;  %651 = vmatprep.mubr.f32.mxu1 %v3148_v1  ;;  %v2933_v46 = vld [vmem:[%s3293_s21 + $0x138] sm:$0xff] }
  0x4f   : > { %490 = vmatprep.mubr.f32.mxu0 %v3148_v1 }
  0x51   : > { %2867 = vmatmul.mubr.msk.f32.gmra.mxu1 %vm323_vm0, %v316_v47 }
  0x52   : > { %2851 = vmatmul.mubr.msk.f32.gmra.mxu0 %vm323_vm0, %v316_v47  ;;  %657 = vmatprep.mubr.f32.mxu1 %v3148_v1  ;;  %v2934_v47 = vld [vmem:[%s3293_s21 + $0x140] sm:$0xff] }
  0x53   : > { %496 = vmatprep.mubr.f32.mxu0 %v3148_v1 }
  0x55   : > { %2868 = vmatmul.mubr.msk.f32.gmra.mxu1 %vm323_vm0, %v317_v48 }
  0x56   : > { %2852 = vmatmul.mubr.msk.f32.gmra.mxu0 %vm323_vm0, %v317_v48  ;;  %663 = vmatprep.mubr.f32.mxu1 %v3148_v1  ;;  %v2935_v48 = vld [vmem:[%s3293_s21 + $0x148] sm:$0xff] }
  0x57   : > { %502 = vmatprep.mubr.f32.mxu0 %v3148_v1 }
  0x59   : > { %2869 = vmatmul.mubr.msk.f32.gmra.mxu1 %vm323_vm0, %v318_v49 }
  0x5a   : > { %2853 = vmatmul.mubr.msk.f32.gmra.mxu0 %vm323_vm0, %v318_v49  ;;  %669 = vmatprep.mubr.f32.mxu1 %v3148_v1  ;;  %v2936_v49 = vld [vmem:[%s3293_s21 + $0x150] sm:$0xff] }
  0x5b   : > { %508 = vmatprep.mubr.f32.mxu0 %v3148_v1 }
  0x5d   : > { %2870 = vmatmul.mubr.msk.f32.gmra.mxu1 %vm323_vm0, %v319_v50 }
  0x5e   : > { %2854 = vmatmul.mubr.msk.f32.gmra.mxu0 %vm323_vm0, %v319_v50  ;;  %675 = vmatprep.mubr.f32.mxu1 %v3148_v1  ;;  %v2937_v50 = vld [vmem:[%s3293_s21 + $0x158] sm:$0xff] }
  0x5f   : > { %514 = vmatprep.mubr.f32.mxu0 %v3148_v1 }
  0x61   : > { %2871 = vmatmul.mubr.msk.f32.gmra.mxu1 %vm323_vm0, %v320_v53 }
  0x62   : > { %2855 = vmatmul.mubr.msk.f32.gmra.mxu0 %vm323_vm0, %v320_v53  ;;  %681 = vmatprep.mubr.f32.mxu1 %v3148_v1  ;;  %v2939_v53 = vld [vmem:[%s3293_s21 + $0x168] sm:$0xff] }
  0x63   : > { %520 = vmatprep.mubr.f32.mxu0 %v3148_v1 }
  0x65   : > { %2872 = vmatmul.mubr.msk.f32.gmra.mxu1 %vm323_vm0, %v321_v58 }
  0x66   : > { %2856 = vmatmul.mubr.msk.f32.gmra.mxu0 %vm323_vm0, %v321_v58  ;;  %687 = vmatprep.mubr.f32.mxu1 %v3148_v1  ;;  %v270_v58 = vrot.slane %v2841_v52, %v3250_v5 }
  0x67   : > { %526 = vmatprep.mubr.f32.mxu0 %v3148_v1 }
  0x68   : > { %v278_v10 = vsub.f32 %v270_v58, %v3263_v9  ;;  %v282_v11 = vsub.f32 %v270_v58, %v3261_v8 }
  0x69   : > { %2873 = vmatmul.mubr.msk.f32.gmra.mxu1 %vm323_vm0, %v322_v2 }
  0x6a   : > { %2857 = vmatmul.mubr.msk.f32.gmra.mxu0 %vm323_vm0, %v322_v2  ;;  %1414 = vmatprep.mubr.f32.mxu1 %v3148_v1  ;;  %v279_v2 = vsub.f32 %v258_v56, %v3261_v8 }
  0x6b   : > { %1253 = vmatprep.mubr.f32.mxu0 %v3148_v1 }
  0x6d   : > { %2908 = vmatmul.mubr.msk.f32.vlgmr.msra.gmra.mxu1 %vm323_vm0, %v2876_v15 }
  0x6e   : > { %2892 = vmatmul.mubr.msk.f32.vlgmr.msra.gmra.mxu0 %vm323_vm0, %v2876_v15  ;;  %2196 = vmatpush1.msra.mxu1 %v1886_v16  ;;  %v1079_v15 = vrot.slane %v2875_v55, %v3248_v4  ;;  %v2941_v16 = vld [vmem:[%s3293_s21 + $0x178] sm:$0xff] }
  0x6f   : > { %2035 = vmatpush1.msra.mxu0 %v1884_v17  ;;  %1259 = vmatprep.mubr.f32.mxu0 %v3148_v1  ;;  %v285_v17 = vand.u32 2147483647, %v277_v62 }
  0x70   : > { %1420 = vmatprep.mubr.f32.mxu1 %v3148_v1  ;;  %2036 = vmatprep.subr.mxu0 %v1881_v20  ;;  %v1087_v20 = vrot.slane %v2875_v55, %v3250_v5 }
  0x71   : > { %2909 = vmatmul.mubr.msk.f32.gmra.mxu1 %vm323_vm0, %v2877_v19  ;;  %2197 = vmatprep.subr.mxu1 %v1883_v22  ;;  %v287_v22 = vand.u32 2147483647, %v279_v2 }
  0x72   : > { %2893 = vmatmul.mubr.msk.f32.gmra.mxu0 %vm323_vm0, %v2877_v19  ;;  %1426 = vmatprep.mubr.f32.mxu1 %v3148_v1  ;;  %v284_v19 = vand.u32 2147483647, %v276_v3 }
  0x73   : > { %1265 = vmatprep.mubr.f32.mxu0 %v3148_v1  ;;  %2037 = vmatpush1.msra.mxu0 %v1880_v23  ;;  %v286_v23 = vand.u32 2147483647, %v278_v10 }
  0x74   : > { %2198 = vmatpush1.msra.mxu1 %v1882_v24  ;;  %v290_v24 = vand.u32 2147483647, %v282_v11 }
  0x75   : > { %2910 = vmatmul.mubr.msk.f32.gmra.mxu1 %vm323_vm0, %v2878_v25 }
  0x76   : > { %2894 = vmatmul.mubr.msk.f32.gmra.mxu0 %vm323_vm0, %v2878_v25  ;;  %1432 = vmatprep.mubr.f32.mxu1 %v3148_v1  ;;  %v288_v25 = vand.u32 2147483647, %v280_v12 }
  0x77   : > { %1271 = vmatprep.mubr.f32.mxu0 %v3148_v1 }
  0x79   : > { %2911 = vmatmul.mubr.msk.f32.gmra.mxu1 %vm323_vm0, %v2879_v26 }
  0x7a   : > { %2895 = vmatmul.mubr.msk.f32.gmra.mxu0 %vm323_vm0, %v2879_v26  ;;  %1438 = vmatprep.mubr.f32.mxu1 %v3148_v1  ;;  %v1100_v26 = vand.u32 2147483647, %v1092_v13 }
  0x7b   : > { %1277 = vmatprep.mubr.f32.mxu0 %v3148_v1 }
  0x7d   : > { %2912 = vmatmul.mubr.msk.f32.gmra.mxu1 %vm323_vm0, %v2880_v27 }
  0x7e   : > { %2896 = vmatmul.mubr.msk.f32.gmra.mxu0 %vm323_vm0, %v2880_v27  ;;  %1444 = vmatprep.mubr.f32.mxu1 %v3148_v1  ;;  %v1102_v27 = vand.u32 2147483647, %v1094_v14 }
  0x7f   : > { %1283 = vmatprep.mubr.f32.mxu0 %v3148_v1 }
  0x81   : > { %2913 = vmatmul.mubr.msk.f32.gmra.mxu1 %vm323_vm0, %v2881_v28 }
  0x82   : > { %2897 = vmatmul.mubr.msk.f32.gmra.mxu0 %vm323_vm0, %v2881_v28  ;;  %1450 = vmatprep.mubr.f32.mxu1 %v3148_v1  ;;  %v1093_v28 = vsub.f32 %v1079_v15, %v3263_v9 }
  0x83   : > { %1289 = vmatprep.mubr.f32.mxu0 %v3148_v1 }
  0x85   : > { %2914 = vmatmul.mubr.msk.f32.gmra.mxu1 %vm323_vm0, %v2882_v29 }
  0x86   : > { %2898 = vmatmul.mubr.msk.f32.gmra.mxu0 %vm323_vm0, %v2882_v29  ;;  %1456 = vmatprep.mubr.f32.mxu1 %v3148_v1  ;;  %v293_v29 = vsub.f32 1.0, %v285_v17 }
  0x87   : > { %1295 = vmatprep.mubr.f32.mxu0 %v3148_v1 }
  0x89   : > { %2915 = vmatmul.mubr.msk.f32.gmra.mxu1 %vm323_vm0, %v2883_v30 }
  0x8a   : > { %2899 = vmatmul.mubr.msk.f32.gmra.mxu0 %vm323_vm0, %v2883_v30  ;;  %1462 = vmatprep.mubr.f32.mxu1 %v3148_v1  ;;  %v297_v30 = vsub.f32 1.0, %v289_v18 }
  0x8b   : > { %1301 = vmatprep.mubr.f32.mxu0 %v3148_v1 }
  0x8d   : > { %2916 = vmatmul.mubr.msk.f32.gmra.mxu1 %vm323_vm0, %v2884_v31 }
  0x8e   : > { %2900 = vmatmul.mubr.msk.f32.gmra.mxu0 %vm323_vm0, %v2884_v31  ;;  %1468 = vmatprep.mubr.f32.mxu1 %v3148_v1  ;;  %v1095_v31 = vsub.f32 %v1087_v20, %v3263_v9 }
  0x8f   : > { %1307 = vmatprep.mubr.f32.mxu0 %v3148_v1 }
  0x91   : > { %2917 = vmatmul.mubr.msk.f32.gmra.mxu1 %vm323_vm0, %v2885_v32 }
  0x92   : > { %2901 = vmatmul.mubr.msk.f32.gmra.mxu0 %vm323_vm0, %v2885_v32  ;;  %1474 = vmatprep.mubr.f32.mxu1 %v3148_v1  ;;  %v291_v32 = vsub.f32 1.0, %v283_v21 }
  0x93   : > { %1313 = vmatprep.mubr.f32.mxu0 %v3148_v1 }
  0x95   : > { %2918 = vmatmul.mubr.msk.f32.gmra.mxu1 %vm323_vm0, %v2886_v33 }
  0x96   : > { %2902 = vmatmul.mubr.msk.f32.gmra.mxu0 %vm323_vm0, %v2886_v33  ;;  %1480 = vmatprep.mubr.f32.mxu1 %v3148_v1  ;;  %v295_v33 = vsub.f32 1.0, %v287_v22 }
  0x97   : > { %1319 = vmatprep.mubr.f32.mxu0 %v3148_v1 }
  0x99   : > { %2919 = vmatmul.mubr.msk.f32.gmra.mxu1 %vm323_vm0, %v2887_v34 }
  0x9a   : > { %2903 = vmatmul.mubr.msk.f32.gmra.mxu0 %vm323_vm0, %v2887_v34  ;;  %1486 = vmatprep.mubr.f32.mxu1 %v3148_v1  ;;  %v1098_v34 = vsub.f32 %v1083_v60, %v3261_v8 }
  0x9b   : > { %1325 = vmatprep.mubr.f32.mxu0 %v3148_v1 }
  0x9c   : > { %v1106_v54 = vand.u32 2147483647, %v1098_v34 }
  0x9d   : > { %2920 = vmatmul.mubr.msk.f32.gmra.mxu1 %vm323_vm0, %v2888_v35 }
  0x9e   : > { %2904 = vmatmul.mubr.msk.f32.gmra.mxu0 %vm323_vm0, %v2888_v35  ;;  %1492 = vmatprep.mubr.f32.mxu1 %v3148_v1  ;;  %v1097_v35 = vsub.f32 %v1079_v15, %v3261_v8 }
  0x9f   : > { %1331 = vmatprep.mubr.f32.mxu0 %v3148_v1 }
  0xa0   : > { %v1105_v55 = vand.u32 2147483647, %v1097_v35 }
  0xa1   : > { %2921 = vmatmul.mubr.msk.f32.gmra.mxu1 %vm323_vm0, %v2889_v36 }
  0xa2   : > { %2905 = vmatmul.mubr.msk.f32.gmra.mxu0 %vm323_vm0, %v2889_v36  ;;  %1498 = vmatprep.mubr.f32.mxu1 %v3148_v1  ;;  %v292_v36 = vsub.f32 1.0, %v284_v19  ;;  %v1113_v17 = vsub.f32 1.0, %v1105_v55 }
  0xa3   : > { %1337 = vmatprep.mubr.f32.mxu0 %v3148_v1 }
  0xa4   : > { %v3604_v56 = vmax.f32 %v292_v36, 0.0  ;;  %v3632_v36 = vmax.f32 %v1113_v17, 0.0 }
  0xa5   : > { %2922 = vmatmul.mubr.msk.f32.gmra.mxu1 %vm323_vm0, %v2890_v37 }
  0xa6   : > { %2906 = vmatmul.mubr.msk.f32.gmra.mxu0 %vm323_vm0, %v2890_v37  ;;  %1504 = vmatprep.mubr.f32.mxu1 %v3148_v1  ;;  %v294_v37 = vsub.f32 1.0, %v286_v23 }
  0xa7   : > { %1343 = vmatprep.mubr.f32.mxu0 %v3148_v1 }
  0xa8   : > { %v3606_v57 = vmax.f32 %v294_v37, 0.0 }
  0xa9   : > { %2923 = vmatmul.mubr.msk.f32.gmra.mxu1 %vm323_vm0, %v2891_v38 }
  0xaa   : > { %2907 = vmatmul.mubr.msk.f32.gmra.mxu0 %vm323_vm0, %v2891_v38  ;;  %2231 = vmatprep.mubr.f32.mxu1 %v3148_v1  ;;  %v298_v38 = vsub.f32 1.0, %v290_v24 }
  0xab   : > { %2070 = vmatprep.mubr.f32.mxu0 %v3148_v1 }
  0xac   : > { %v3608_v58 = vmax.f32 %v298_v38, 0.0 }
  0xad   : > { %2958 = vmatmul.mubr.msk.f32.vlgmr.msra.gmra.mxu1 %vm323_vm0, %v2926_v39 }
  0xae   : > { %2942 = vmatmul.mubr.msk.f32.vlgmr.msra.gmra.mxu0 %vm323_vm0, %v2926_v39  ;;  %2237 = vmatprep.mubr.f32.mxu1 %v3148_v1  ;;  %v1099_v39 = vsub.f32 %v1087_v20, %v3261_v8 }
  0xaf   : > { %2076 = vmatprep.mubr.f32.mxu0 %v3148_v1 }
  0xb1   : > { %2959 = vmatmul.mubr.msk.f32.gmra.mxu1 %vm323_vm0, %v2927_v40 }
  0xb2   : > { %2943 = vmatmul.mubr.msk.f32.gmra.mxu0 %vm323_vm0, %v2927_v40  ;;  %2243 = vmatprep.mubr.f32.mxu1 %v3148_v1 }
  0xb3   : > { %2082 = vmatprep.mubr.f32.mxu0 %v3148_v1 }
  0xb5   : > { %2960 = vmatmul.mubr.msk.f32.gmra.mxu1 %vm323_vm0, %v2928_v41 }
  0xb6   : > { %2944 = vmatmul.mubr.msk.f32.gmra.mxu0 %vm323_vm0, %v2928_v41  ;;  %2249 = vmatprep.mubr.f32.mxu1 %v3148_v1 }
  0xb7   : > { %2088 = vmatprep.mubr.f32.mxu0 %v3148_v1 }
  0xb9   : > { %2961 = vmatmul.mubr.msk.f32.gmra.mxu1 %vm323_vm0, %v2929_v42 }
  0xba   : > { %2945 = vmatmul.mubr.msk.f32.gmra.mxu0 %vm323_vm0, %v2929_v42  ;;  %2255 = vmatprep.mubr.f32.mxu1 %v3148_v1  ;;  %v296_v42 = vsub.f32 1.0, %v288_v25 }
  0xbb   : > { %2094 = vmatprep.mubr.f32.mxu0 %v3148_v1 }
  0xbd   : > { %2962 = vmatmul.mubr.msk.f32.gmra.mxu1 %vm323_vm0, %v2930_v43 }
  0xbe   : > { %2946 = vmatmul.mubr.msk.f32.gmra.mxu0 %vm323_vm0, %v2930_v43  ;;  %2261 = vmatprep.mubr.f32.mxu1 %v3148_v1  ;;  %v1108_v43 = vsub.f32 1.0, %v1100_v26 }
  0xbf   : > { %2100 = vmatprep.mubr.f32.mxu0 %v3148_v1 }
  0xc0   : > { %v3612_v62 = vmax.f32 %v1108_v43, 0.0 }
  0xc1   : > { %2963 = vmatmul.mubr.msk.f32.gmra.mxu1 %vm323_vm0, %v2931_v44 }
  0xc2   : > { %2947 = vmatmul.mubr.msk.f32.gmra.mxu0 %vm323_vm0, %v2931_v44  ;;  %2267 = vmatprep.mubr.f32.mxu1 %v3148_v1  ;;  %v1110_v44 = vsub.f32 1.0, %v1102_v27 }
  0xc3   : > { %2106 = vmatprep.mubr.f32.mxu0 %v3148_v1 }
  0xc4   : > { %v3614_v63 = vmax.f32 %v1110_v44, 0.0 }
  0xc5   : > { %2964 = vmatmul.mubr.msk.f32.gmra.mxu1 %vm323_vm0, %v2932_v45 }
  0xc6   : > { %2948 = vmatmul.mubr.msk.f32.gmra.mxu0 %vm323_vm0, %v2932_v45  ;;  %2273 = vmatprep.mubr.f32.mxu1 %v3148_v1  ;;  %v1101_v45 = vand.u32 2147483647, %v1093_v28 }
  0xc7   : > { %2112 = vmatprep.mubr.f32.mxu0 %v3148_v1 }
  0xc8   : > { %v1109_v0 = vsub.f32 1.0, %v1101_v45 }
  0xc9   : > { %2965 = vmatmul.mubr.msk.f32.gmra.mxu1 %vm323_vm0, %v2933_v46 }
  0xca   : > { %2949 = vmatmul.mubr.msk.f32.gmra.mxu0 %vm323_vm0, %v2933_v46  ;;  %2279 = vmatprep.mubr.f32.mxu1 %v3148_v1  ;;  %v3596_v46 = vmax.f32 %v293_v29, 0.0  ;;  %v3624_v27 = vmax.f32 %v1109_v0, 0.0 }
  0xcb   : > { %2118 = vmatprep.mubr.f32.mxu0 %v3148_v1 }
  0xcd   : > { %2966 = vmatmul.mubr.msk.f32.gmra.mxu1 %vm323_vm0, %v2934_v47 }
  0xce   : > { %2950 = vmatmul.mubr.msk.f32.gmra.mxu0 %vm323_vm0, %v2934_v47  ;;  %2285 = vmatprep.mubr.f32.mxu1 %v3148_v1  ;;  %v3598_v47 = vmax.f32 %v297_v30, 0.0 }
  0xcf   : > { %2124 = vmatprep.mubr.f32.mxu0 %v3148_v1 }
  0xd1   : > { %2967 = vmatmul.mubr.msk.f32.gmra.mxu1 %vm323_vm0, %v2935_v48 }
  0xd2   : > { %2951 = vmatmul.mubr.msk.f32.gmra.mxu0 %vm323_vm0, %v2935_v48  ;;  %2291 = vmatprep.mubr.f32.mxu1 %v3148_v1  ;;  %v1103_v48 = vand.u32 2147483647, %v1095_v31 }
  0xd3   : > { %2130 = vmatprep.mubr.f32.mxu0 %v3148_v1 }
  0xd4   : > { %v1111_v11 = vsub.f32 1.0, %v1103_v48 }
  0xd5   : > { %2968 = vmatmul.mubr.msk.f32.gmra.mxu1 %vm323_vm0, %v2936_v49 }
  0xd6   : > { %2952 = vmatmul.mubr.msk.f32.gmra.mxu0 %vm323_vm0, %v2936_v49  ;;  %2297 = vmatprep.mubr.f32.mxu1 %v3148_v1  ;;  %v3626_v31 = vmax.f32 %v1111_v11, 0.0 }
  0xd7   : > { %2136 = vmatprep.mubr.f32.mxu0 %v3148_v1 }
  0xd9   : > { %2969 = vmatmul.mubr.msk.f32.gmra.mxu1 %vm323_vm0, %v2937_v50 }
  0xda   : > { %2953 = vmatmul.mubr.msk.f32.gmra.mxu0 %vm323_vm0, %v2937_v50  ;;  %2303 = vmatprep.mubr.f32.mxu1 %v3148_v1  ;;  %v3600_v50 = vmax.f32 %v291_v32, 0.0 }
  0xdb   : > { %2142 = vmatprep.mubr.f32.mxu0 %v3148_v1 }
  0xdd   : > { %2970 = vmatmul.mubr.msk.f32.gmra.mxu1 %vm323_vm0, %v2938_v51 }
  0xde   : > { %2954 = vmatmul.mubr.msk.f32.gmra.mxu0 %vm323_vm0, %v2938_v51  ;;  %2309 = vmatprep.mubr.f32.mxu1 %v3148_v1 }
  0xdf   : > { %2148 = vmatprep.mubr.f32.mxu0 %v3148_v1 }
  0xe1   : > { %2971 = vmatmul.mubr.msk.f32.gmra.mxu1 %vm323_vm0, %v2939_v53 }
  0xe2   : > { %2955 = vmatmul.mubr.msk.f32.gmra.mxu0 %vm323_vm0, %v2939_v53  ;;  %2315 = vmatprep.mubr.f32.mxu1 %v3148_v1  ;;  %v3602_v53 = vmax.f32 %v295_v33, 0.0 }
  0xe3   : > { %2154 = vmatprep.mubr.f32.mxu0 %v3148_v1 }
  0xe5   : > { %2972 = vmatmul.mubr.msk.f32.gmra.mxu1 %vm323_vm0, %v2940_v61 }
  0xe6   : > { %2956 = vmatmul.mubr.msk.f32.gmra.mxu0 %vm323_vm0, %v2940_v61  ;;  %2321 = vmatprep.mubr.f32.mxu1 %v3148_v1  ;;  %v3610_v61 = vmax.f32 %v296_v42, 0.0 }
  0xe7   : > { %2160 = vmatprep.mubr.f32.mxu0 %v3148_v1  ;;  %v1096_v1 = vsub.f32 %v1075_v59, %v3261_v8  ;;  %v1107_v59 = vand.u32 2147483647, %v1099_v39 }
  0xe9   : > { %2973 = vmatmul.mubr.msk.f32.gmra.mxu1 %vm323_vm0, %v2941_v16  ;;  %v1104_v49 = vand.u32 2147483647, %v1096_v1  ;;  %v1115_v19 = vsub.f32 1.0, %v1107_v59  ;;  %v2925_v59 = vld [vmem:[%s3259_s8 + $0x5] ss:$8 sm:$0xf] }
  0xea   : > { %2957 = vmatmul.mubr.msk.f32.gmra.mxu0 %vm323_vm0, %v2941_v16  ;;  %v1114_v16 = vsub.f32 1.0, %v1106_v54 }
  0xeb   : > { %v1112_v12 = vsub.f32 1.0, %v1104_v49 }
  0xec   : > { %v3630_v35 = vmax.f32 %v1114_v16, 0.0 }
  0xed   : > { %v438_v40 = vpop.f32.mrf.mxu0  ;;  %v599_v41 = vpop.f32.mrf.mxu1  ;;  %v3628_v1 = vmax.f32 %v1112_v12, 0.0 }
  0xee   : > { %v696_v2 = vmul.f32 %v599_v41, %v3596_v46  ;;  %v694_v13 = vmul.f32 %v438_v40, %v3600_v50  ;;  %v3635_v41 = vmax.f32 %v1115_v19, 0.0 }
  0xef   : > { %v440_v51 = vpop.f32.mrf.mxu0  ;;  %v601_v52 = vpop.f32.mrf.mxu1 }
  0xf0   : > { %v697_v18 = vmul.f32 %v601_v52, %v3606_v57  ;;  %v695_v23 = vmul.f32 %v440_v51, %v3604_v56 }
  0xf1   : > { %v605_v60 = vpop.f32.mrf.mxu1 }
  0xf2   : > { %v444_v3 = vpop.f32.mrf.mxu0  ;;  %v700_v10 = vmul.f32 %v605_v60, %v3598_v47 }
  0xf3   : > { %v698_v14 = vmul.f32 %v444_v3, %v3602_v53  ;;  %v607_v15 = vpop.f32.mrf.mxu1 }
  0xf4   : > { %v772_v20 = vadd.f32 %v700_v10, %v696_v2  ;;  %v446_v21 = vpop.f32.mrf.mxu0  ;;  %v701_v22 = vmul.f32 %v607_v15, %v3608_v58  ;;  %v3644_v10 = vrot.slane %v2925_v59, %v3252_v6 }
  0xf5   : > { %v758_v24 = vadd.f32 %v698_v14, %v694_v13  ;;  %v699_v25 = vmul.f32 %v446_v21, %v3610_v61  ;;  %v611_v26 = vpop.f32.mrf.mxu1 }
  0xf6   : > { %v773_v28 = vrot.slane %v772_v20, 4  ;;  %v779_v29 = vadd.f32 %v701_v22, %v697_v18  ;;  %v450_v30 = vpop.f32.mrf.mxu0  ;;  %v704_v39 = vmul.f32 %v611_v26, %v3596_v46  ;;  %4492 = vst [vmem:[#allocation10_spill] sm:$0xff] %v3644_v10 }
  0xf7   : > { %v759_v32 = vrot.slane %v758_v24, 4  ;;  %v765_v33 = vadd.f32 %v699_v25, %v695_v23  ;;  %v613_v34 = vpop.f32.mrf.mxu1  ;;  %v702_v44 = vmul.f32 %v450_v30, %v3600_v50 }
  0xf8   : > { %v774_v37 = vadd.f32 %v773_v28, %v772_v20  ;;  %v780_v38 = vrot.slane %v779_v29, 4  ;;  %v452_v40 = vpop.f32.mrf.mxu0  ;;  %v705_v45 = vmul.f32 %v613_v34, %v3606_v57 }
  0xf9   : > { %v760_v42 = vadd.f32 %v759_v32, %v758_v24  ;;  %v766_v43 = vrot.slane %v765_v33, 4  ;;  %v617_v48 = vpop.f32.mrf.mxu1  ;;  %v703_v52 = vmul.f32 %v452_v40, %v3604_v56 }
  0xfa   : > { %v775_v49 = vrot.slane %v774_v37, 2  ;;  %v781_v51 = vadd.f32 %v780_v38, %v779_v29  ;;  %v456_v54 = vpop.f32.mrf.mxu0  ;;  %v708_v55 = vmul.f32 %v617_v48, %v3598_v47 }
  0xfb   : > { %v761_v60 = vrot.slane %v760_v42, 2  ;;  %v767_v0 = vadd.f32 %v766_v43, %v765_v33  ;;  %v706_v2 = vmul.f32 %v456_v54, %v3602_v53  ;;  %v619_v3 = vpop.f32.mrf.mxu1 }
  0xfc   : > { %v776_v11 = vadd.f32 %v775_v49, %v774_v37  ;;  %v782_v12 = vrot.slane %v781_v51, 2  ;;  %v800_v13 = vadd.f32 %v708_v55, %v704_v39  ;;  %v458_v14 = vpop.f32.mrf.mxu0  ;;  %v709_v15 = vmul.f32 %v619_v3, %v3608_v58 }
  0xfd   : > { %v762_v16 = vadd.f32 %v761_v60, %v760_v42  ;;  %v768_v17 = vrot.slane %v767_v0, 2  ;;  %v786_v18 = vadd.f32 %v706_v2, %v702_v44  ;;  %v707_v20 = vmul.f32 %v458_v14, %v3610_v61  ;;  %v623_v21 = vpop.f32.mrf.mxu1 }
  0xfe   : > { %v777_v22 = vrot.slane %v776_v11, 1  ;;  %v783_v19 = vadd.f32 %v782_v12, %v781_v51  ;;  %v801_v23 = vrot.slane %v800_v13, 4  ;;  %v807_v24 = vadd.f32 %v709_v15, %v705_v45  ;;  %v462_v25 = vpop.f32.mrf.mxu0 }
  0xff   : > { %v763_v26 = vrot.slane %v762_v16, 1  ;;  %v769_v6 = vadd.f32 %v768_v17, %v767_v0  ;;  %v787_v28 = vrot.slane %v786_v18, 4  ;;  %v793_v29 = vadd.f32 %v707_v20, %v703_v52  ;;  %v625_v30 = vpop.f32.mrf.mxu1 }
 0x100   : > { %v3648_v32 = vadd.f32 %v777_v22, %v776_v11  ;;  %v784_v33 = vrot.slane %v783_v19, 1  ;;  %v802_v34 = vadd.f32 %v801_v23, %v800_v13  ;;  %v808_v37 = vrot.slane %v807_v24, 4  ;;  %v464_v38 = vpop.f32.mrf.mxu0 }
 0x101   : > { %v3650_v39 = vadd.f32 %v763_v26, %v762_v16  ;;  %v770_v40 = vrot.slane %v769_v6, 1  ;;  %v788_v42 = vadd.f32 %v787_v28, %v786_v18  ;;  %v794_v43 = vrot.slane %v793_v29, 4  ;;  %v629_v44 = vpop.f32.mrf.mxu1 }
 0x102   : > { %v3652_v48 = vadd.f32 %v784_v33, %v783_v19  ;;  %v803_v45 = vrot.slane %v802_v34, 2  ;;  %v809_v49 = vadd.f32 %v808_v37, %v807_v24  ;;  %v710_v51 = vmul.f32 %v462_v25, %v3600_v50  ;;  %v468_v52 = vpop.f32.mrf.mxu0 }
 0x103   : > { %v3655_v54 = vadd.f32 %v770_v40, %v769_v6  ;;  %v789_v55 = vrot.slane %v788_v42, 2  ;;  %v795_v59 = vadd.f32 %v794_v43, %v793_v29  ;;  %v712_v60 = vmul.f32 %v623_v21, %v3596_v46  ;;  %v631_v0 = vpop.f32.mrf.mxu1 }
 0x104   : > { %v804_v2 = vadd.f32 %v803_v45, %v802_v34  ;;  %v810_v3 = vrot.slane %v809_v49, 2  ;;  %v711_v11 = vmul.f32 %v464_v38, %v3604_v56  ;;  %v713_v12 = vmul.f32 %v625_v30, %v3606_v57  ;;  %v470_v13 = vpop.f32.mrf.mxu0 }
 0x105   : > { %v790_v14 = vadd.f32 %v789_v55, %v788_v42  ;;  %v796_v15 = vrot.slane %v795_v59, 2  ;;  %v714_v16 = vmul.f32 %v468_v52, %v3602_v53  ;;  %v716_v17 = vmul.f32 %v629_v44, %v3598_v47  ;;  %v635_v18 = vpop.f32.mrf.mxu1 }
 0x106   : > { %v805_v20 = vrot.slane %v804_v2, 1  ;;  %v811_v22 = vadd.f32 %v810_v3, %v809_v49  ;;  %v715_v19 = vmul.f32 %v470_v13, %v3610_v61  ;;  %v717_v21 = vmul.f32 %v631_v0, %v3608_v58  ;;  %v474_v23 = vpop.f32.mrf.mxu0 }
 0x107   : > { %v791_v24 = vrot.slane %v790_v14, 1  ;;  %v797_v25 = vadd.f32 %v796_v15, %v795_v59  ;;  %v814_v26 = vadd.f32 %v714_v16, %v710_v51  ;;  %v828_v6 = vadd.f32 %v716_v17, %v712_v60  ;;  %v637_v28 = vpop.f32.mrf.mxu1 }
 0x108   : > { %v3664_v29 = vadd.f32 %v805_v20, %v804_v2  ;;  %v812_v30 = vrot.slane %v811_v22, 1  ;;  %v821_v33 = vadd.f32 %v715_v19, %v711_v11  ;;  %v835_v34 = vadd.f32 %v717_v21, %v713_v12  ;;  %v476_v37 = vpop.f32.mrf.mxu0 }
 0x109   : > { %v3666_v38 = vadd.f32 %v791_v24, %v790_v14  ;;  %v798_v40 = vrot.slane %v797_v25, 1  ;;  %v815_v42 = vrot.slane %v814_v26, 4  ;;  %v829_v43 = vrot.slane %v828_v6, 4  ;;  %v641_v44 = vpop.f32.mrf.mxu1 }
 0x10a   : > { %v3668_v45 = vadd.f32 %v812_v30, %v811_v22  ;;  %v822_v49 = vrot.slane %v821_v33, 4  ;;  %v836_v52 = vrot.slane %v835_v34, 4  ;;  %v718_v51 = vmul.f32 %v474_v23, %v3600_v50  ;;  %v480_v55 = vpop.f32.mrf.mxu0 }
 0x10b   : > { %v3671_v59 = vadd.f32 %v798_v40, %v797_v25  ;;  %v816_v60 = vadd.f32 %v815_v42, %v814_v26  ;;  %v830_v0 = vadd.f32 %v829_v43, %v828_v6  ;;  %v720_v2 = vmul.f32 %v635_v18, %v3596_v46  ;;  %v643_v3 = vpop.f32.mrf.mxu1 }
 0x10c   : > { %v823_v11 = vadd.f32 %v822_v49, %v821_v33  ;;  %v837_v12 = vadd.f32 %v836_v52, %v835_v34  ;;  %v719_v13 = vmul.f32 %v476_v37, %v3604_v56  ;;  %v721_v14 = vmul.f32 %v637_v28, %v3606_v57  ;;  %v482_v15 = vpop.f32.mrf.mxu0 }
 0x10d   : > { %v817_v16 = vrot.slane %v816_v60, 2  ;;  %v831_v17 = vrot.slane %v830_v0, 2  ;;  %v722_v20 = vmul.f32 %v480_v55, %v3602_v53  ;;  %v724_v22 = vmul.f32 %v641_v44, %v3598_v47  ;;  %v647_v19 = vpop.f32.mrf.mxu1 }
 0x10e   : > { %v824_v21 = vrot.slane %v823_v11, 2  ;;  %v838_v23 = vrot.slane %v837_v12, 2  ;;  %v723_v24 = vmul.f32 %v482_v15, %v3610_v61  ;;  %v725_v18 = vmul.f32 %v643_v3, %v3608_v58  ;;  %v486_v25 = vpop.f32.mrf.mxu0 }
 0x10f   : > { %v818_v26 = vadd.f32 %v817_v16, %v816_v60  ;;  %v832_v6 = vadd.f32 %v831_v17, %v830_v0  ;;  %v842_v30 = vadd.f32 %v722_v20, %v718_v51  ;;  %v856_v33 = vadd.f32 %v724_v22, %v720_v2  ;;  %v649_v28 = vpop.f32.mrf.mxu1 }
 0x110   : > { %v825_v34 = vadd.f32 %v824_v21, %v823_v11  ;;  %v839_v37 = vadd.f32 %v838_v23, %v837_v12  ;;  %v849_v40 = vadd.f32 %v723_v24, %v719_v13  ;;  %v863_v42 = vadd.f32 %v725_v18, %v721_v14  ;;  %v488_v43 = vpop.f32.mrf.mxu0 }
 0x111   : > { %v819_v49 = vrot.slane %v818_v26, 1  ;;  %v833_v44 = vrot.slane %v832_v6, 1  ;;  %v843_v52 = vrot.slane %v842_v30, 4  ;;  %v857_v55 = vrot.slane %v856_v33, 4  ;;  %v653_v8 = vpop.f32.mrf.mxu1 }
 0x112   : > { %v826_v5 = vrot.slane %v825_v34, 1  ;;  %v840_v15 = vrot.slane %v839_v37, 1  ;;  %v850_v4 = vrot.slane %v849_v40, 4  ;;  %v864_v3 = vrot.slane %v863_v42, 4  ;;  %v492_v7 = vpop.f32.mrf.mxu0 }
 0x113   : > { %v3680_v60 = vadd.f32 %v819_v49, %v818_v26  ;;  %v3682_v51 = vadd.f32 %v833_v44, %v832_v6  ;;  %v844_v0 = vadd.f32 %v843_v52, %v842_v30  ;;  %v858_v2 = vadd.f32 %v857_v55, %v856_v33  ;;  %v655_v11 = vpop.f32.mrf.mxu1 }
 0x114   : > { %v3684_v12 = vadd.f32 %v826_v5, %v825_v34  ;;  %v3686_v13 = vadd.f32 %v840_v15, %v839_v37  ;;  %v851_v14 = vadd.f32 %v850_v4, %v849_v40  ;;  %v865_v16 = vadd.f32 %v864_v3, %v863_v42  ;;  %v494_v17 = vpop.f32.mrf.mxu0 }
 0x115   : > { %4493 = vst [vmem:[#allocation11_spill] sm:$0xff] %v3680_v60  ;;  %4494 = vst [vmem:[#allocation12_spill] sm:$0xff] %v3682_v51  ;;  %v845_v20 = vrot.slane %v844_v0, 2  ;;  %v859_v22 = vrot.slane %v858_v2, 2  ;;  %v726_v21 = vmul.f32 %v486_v25, %v3600_v50  ;;  %v728_v23 = vmul.f32 %v647_v19, %v3596_v46  ;;  %v659_v24 = vpop.f32.mrf.mxu1 }
 0x116   : > { %4495 = vst [vmem:[#allocation13_spill] sm:$0xff] %v3684_v12  ;;  %4496 = vst [vmem:[#allocation14_spill] sm:$0xff] %v3686_v13  ;;  %v852_v18 = vrot.slane %v851_v14, 2  ;;  %v866_v26 = vrot.slane %v865_v16, 2  ;;  %v727_v6 = vmul.f32 %v488_v43, %v3604_v56  ;;  %v729_v30 = vmul.f32 %v649_v28, %v3606_v57  ;;  %v498_v5 = vpop.f32.mrf.mxu0 }
 0x117   : > { %v846_v33 = vadd.f32 %v845_v20, %v844_v0  ;;  %v860_v34 = vadd.f32 %v859_v22, %v858_v2  ;;  %v730_v4 = vmul.f32 %v492_v7, %v3602_v53  ;;  %v732_v37 = vmul.f32 %v653_v8, %v3598_v47  ;;  %v661_v40 = vpop.f32.mrf.mxu1 }
 0x118   : > { %v853_v42 = vadd.f32 %v852_v18, %v851_v14  ;;  %v867_v49 = vadd.f32 %v866_v26, %v865_v16  ;;  %v731_v25 = vmul.f32 %v494_v17, %v3610_v61  ;;  %v733_v19 = vmul.f32 %v655_v11, %v3608_v58  ;;  %v500_v44 = vpop.f32.mrf.mxu0 }
 0x119   : > { %v847_v52 = vrot.slane %v846_v33, 1  ;;  %v861_v55 = vrot.slane %v860_v34, 1  ;;  %v870_v43 = vadd.f32 %v730_v4, %v726_v21  ;;  %v884_v15 = vadd.f32 %v732_v37, %v728_v23  ;;  %v665_v28 = vpop.f32.mrf.mxu1 }
 0x11a   : > { %v854_v3 = vrot.slane %v853_v42, 1  ;;  %v868_v0 = vrot.slane %v867_v49, 1  ;;  %v877_v2 = vadd.f32 %v731_v25, %v727_v6  ;;  %v891_v20 = vadd.f32 %v733_v19, %v729_v30  ;;  %v504_v7 = vpop.f32.mrf.mxu0 }
 0x11b   : > { %v3696_v22 = vadd.f32 %v847_v52, %v846_v33  ;;  %v3698_v8 = vadd.f32 %v861_v55, %v860_v34  ;;  %v871_v14 = vrot.slane %v870_v43, 4  ;;  %v885_v16 = vrot.slane %v884_v15, 4  ;;  %v667_v17 = vpop.f32.mrf.mxu1 }
 0x11c   : > { %v3700_v18 = vadd.f32 %v854_v3, %v853_v42  ;;  %v3702_v11 = vadd.f32 %v868_v0, %v867_v49  ;;  %v878_v26 = vrot.slane %v877_v2, 4  ;;  %v892_v21 = vrot.slane %v891_v20, 4  ;;  %v506_v23 = vpop.f32.mrf.mxu0 }
 0x11d   : > { %4497 = vst [vmem:[#allocation15_spill] sm:$0xff] %v3696_v22  ;;  %4498 = vst [vmem:[#allocation16_spill] sm:$0xff] %v3698_v8  ;;  %v872_v4 = vadd.f32 %v871_v14, %v870_v43  ;;  %v886_v37 = vadd.f32 %v885_v16, %v884_v15  ;;  %v734_v6 = vmul.f32 %v498_v5, %v3600_v50  ;;  %v671_v33 = vpop.f32.mrf.mxu1 }
 0x11e   : > { %4499 = vst [vmem:[#allocation17_spill] sm:$0xff] %v3700_v18  ;;  %4500 = vst [vmem:[#allocation18_spill] sm:$0xff] %v3702_v11  ;;  %v736_v30 = vmul.f32 %v659_v24, %v3596_v46  ;;  %v879_v25 = vadd.f32 %v878_v26, %v877_v2  ;;  %v893_v34 = vadd.f32 %v892_v21, %v891_v20  ;;  %v510_v42 = vpop.f32.mrf.mxu0 }
 0x11f   : > { %v735_v19 = vmul.f32 %v500_v44, %v3604_v56  ;;  %v737_v52 = vmul.f32 %v661_v40, %v3606_v57  ;;  %v873_v55 = vrot.slane %v872_v4, 2  ;;  %v887_v49 = vrot.slane %v886_v37, 2  ;;  %v673_v43 = vpop.f32.mrf.mxu1 }
 0x120   : > { %v738_v3 = vmul.f32 %v504_v7, %v3602_v53  ;;  %v740_v0 = vmul.f32 %v665_v28, %v3598_v47  ;;  %v880_v15 = vrot.slane %v879_v25, 2  ;;  %v894_v14 = vrot.slane %v893_v34, 2  ;;  %v512_v2 = vpop.f32.mrf.mxu0 }
 0x121   : > { %v739_v5 = vmul.f32 %v506_v23, %v3610_v61  ;;  %v741_v24 = vmul.f32 %v667_v17, %v3608_v58  ;;  %v874_v20 = vadd.f32 %v873_v55, %v872_v4  ;;  %v888_v16 = vadd.f32 %v887_v49, %v886_v37  ;;  %v677_v40 = vpop.f32.mrf.mxu1 }
 0x122   : > { %v898_v44 = vadd.f32 %v738_v3, %v734_v6  ;;  %v912_v26 = vadd.f32 %v740_v0, %v736_v30  ;;  %v881_v21 = vadd.f32 %v880_v15, %v879_v25  ;;  %v895_v10 = vadd.f32 %v894_v14, %v893_v34  ;;  %v516_v7 = vpop.f32.mrf.mxu0 }
 0x123   : > { %v905_v9 = vadd.f32 %v739_v5, %v735_v19  ;;  %v919_v11 = vadd.f32 %v741_v24, %v737_v52  ;;  %v875_v18 = vrot.slane %v874_v20, 1  ;;  %v889_v28 = vrot.slane %v888_v16, 1  ;;  %v679_v13 = vpop.f32.mrf.mxu1 }
 0x124   : > { %v899_v8 = vrot.slane %v898_v44, 4  ;;  %v913_v22 = vrot.slane %v912_v26, 4  ;;  %v882_v12 = vrot.slane %v881_v21, 1  ;;  %v896_v23 = vrot.slane %v895_v10, 1  ;;  %v518_v60 = vpop.f32.mrf.mxu0 }
 0x125   : > { %v906_v51 = vrot.slane %v905_v9, 4  ;;  %v920_v17 = vrot.slane %v919_v11, 4  ;;  %v3712_v4 = vadd.f32 %v875_v18, %v874_v20  ;;  %v3714_v37 = vadd.f32 %v889_v28, %v888_v16  ;;  %v683_v25 = vpop.f32.mrf.mxu1 }
 0x126   : > { %v900_v6 = vadd.f32 %v899_v8, %v898_v44  ;;  %v914_v30 = vadd.f32 %v913_v22, %v912_v26  ;;  %v3716_v34 = vadd.f32 %v882_v12, %v881_v21  ;;  %v3718_v19 = vadd.f32 %v896_v23, %v895_v10  ;;  %v522_v49 = vpop.f32.mrf.mxu0 }
 0x127   : > { %v907_v52 = vadd.f32 %v906_v51, %v905_v9  ;;  %v921_v55 = vadd.f32 %v920_v17, %v919_v11  ;;  %v742_v15 = vmul.f32 %v510_v42, %v3600_v50  ;;  %v744_v14 = vmul.f32 %v671_v33, %v3596_v46  ;;  %v685_v18 = vpop.f32.mrf.mxu1 }
 0x128   : > { %v901_v3 = vrot.slane %v900_v6, 2  ;;  %v915_v0 = vrot.slane %v914_v30, 2  ;;  %v743_v8 = vmul.f32 %v512_v2, %v3604_v56  ;;  %v745_v22 = vmul.f32 %v673_v43, %v3606_v57  ;;  %v524_v12 = vpop.f32.mrf.mxu0 }
 0x129   : > { %v908_v5 = vrot.slane %v907_v52, 2  ;;  %v922_v24 = vrot.slane %v921_v55, 2  ;;  %v746_v9 = vmul.f32 %v516_v7, %v3602_v53  ;;  %v748_v51 = vmul.f32 %v677_v40, %v3598_v47  ;;  %v689_v11 = vpop.f32.mrf.mxu1 }
 0x12a   : > { %v902_v20 = vadd.f32 %v901_v3, %v900_v6  ;;  %v916_v10 = vadd.f32 %v915_v0, %v914_v30  ;;  %v747_v42 = vmul.f32 %v518_v60, %v3610_v61  ;;  %v749_v33 = vmul.f32 %v679_v13, %v3608_v58  ;;  %v528_v26 = vpop.f32.mrf.mxu0 }
 0x12b   : > { %v909_v16 = vadd.f32 %v908_v5, %v907_v52  ;;  %v923_v44 = vadd.f32 %v922_v24, %v921_v55  ;;  %v926_v2 = vadd.f32 %v746_v9, %v742_v15  ;;  %v940_v23 = vadd.f32 %v748_v51, %v744_v14  ;;  %v691_v43 = vpop.f32.mrf.mxu1 }
 0x12c   : > { %v903_v21 = vrot.slane %v902_v20, 1  ;;  %v917_v28 = vrot.slane %v916_v10, 1  ;;  %v933_v30 = vadd.f32 %v747_v42, %v743_v8  ;;  %v947_v3 = vadd.f32 %v749_v33, %v745_v22  ;;  %v530_v7 = vpop.f32.mrf.mxu0 }
 0x12d   : > { %v910_v17 = vrot.slane %v909_v16, 1  ;;  %v924_v6 = vrot.slane %v923_v44, 1  ;;  %v927_v52 = vrot.slane %v926_v2, 4  ;;  %v941_v55 = vrot.slane %v940_v23, 4  ;;  %v1416_v60 = vpop.f32.mrf.mxu1 }
 0x12e   : > { %v3728_v0 = vadd.f32 %v903_v21, %v902_v20  ;;  %v3730_v40 = vadd.f32 %v917_v28, %v916_v10  ;;  %v934_v24 = vrot.slane %v933_v30, 4  ;;  %v948_v15 = vrot.slane %v947_v3, 4  ;;  %v1255_v14 = vpop.f32.mrf.mxu0 }
 0x12f   : > { %v3732_v5 = vadd.f32 %v910_v17, %v909_v16  ;;  %v3734_v13 = vadd.f32 %v924_v6, %v923_v44  ;;  %v928_v9 = vadd.f32 %v927_v52, %v926_v2  ;;  %v942_v51 = vadd.f32 %v941_v55, %v940_v23  ;;  %v1418_v20 = vpop.f32.mrf.mxu1 }
 0x130   : > { %v750_v8 = vmul.f32 %v522_v49, %v3600_v50  ;;  %v752_v22 = vmul.f32 %v683_v25, %v3596_v46  ;;  %v935_v42 = vadd.f32 %v934_v24, %v933_v30  ;;  %v949_v10 = vadd.f32 %v948_v15, %v947_v3  ;;  %v1257_v16 = vpop.f32.mrf.mxu0 }
 0x131   : > { %4501 = vst [vmem:[#allocation19_spill] sm:$0xff] %v3732_v5  ;;  %4502 = vst [vmem:[#allocation20_spill] sm:$0xff] %v3734_v13  ;;  %v751_v33 = vmul.f32 %v524_v12, %v3604_v56  ;;  %v753_v21 = vmul.f32 %v685_v18, %v3606_v57  ;;  %v929_v28 = vrot.slane %v928_v9, 2  ;;  %v943_v44 = vrot.slane %v942_v51, 2  ;;  %v1422_v2 = vpop.f32.mrf.mxu1 }
 0x132   : > { %v754_v17 = vmul.f32 %v528_v26, %v3602_v53  ;;  %v756_v6 = vmul.f32 %v689_v11, %v3598_v47  ;;  %v936_v23 = vrot.slane %v935_v42, 2  ;;  %v950_v52 = vrot.slane %v949_v10, 2  ;;  %v1261_v25 = vpop.f32.mrf.mxu0 }
 0x133   : > { %v755_v50 = vmul.f32 %v530_v7, %v3610_v61  ;;  %v757_v46 = vmul.f32 %v691_v43, %v3608_v58  ;;  %v930_v49 = vadd.f32 %v929_v28, %v928_v9  ;;  %v944_v30 = vadd.f32 %v943_v44, %v942_v51  ;;  %v1424_v57 = vpop.f32.mrf.mxu1 }
 0x134   : > { %v954_v56 = vadd.f32 %v754_v17, %v750_v8  ;;  %v968_v12 = vadd.f32 %v756_v6, %v752_v22  ;;  %v937_v18 = vadd.f32 %v936_v23, %v935_v42  ;;  %v951_v3 = vadd.f32 %v950_v52, %v949_v10  ;;  %v1263_v53 = vpop.f32.mrf.mxu0 }
 0x135   : > { %v961_v55 = vadd.f32 %v755_v50, %v751_v33  ;;  %v975_v24 = vadd.f32 %v757_v46, %v753_v21  ;;  %v931_v26 = vrot.slane %v930_v49, 1  ;;  %v945_v47 = vrot.slane %v944_v30, 1  ;;  %v1428_v13 = vpop.f32.mrf.mxu1 }
 0x136   : > { %v955_v11 = vrot.slane %v954_v56, 4  ;;  %v969_v15 = vrot.slane %v968_v12, 4  ;;  %v938_v5 = vrot.slane %v937_v18, 1  ;;  %v952_v61 = vrot.slane %v951_v3, 1  ;;  %v1267_v43 = vpop.f32.mrf.mxu0 }
 0x137   : > { %v962_v7 = vrot.slane %v961_v55, 4  ;;  %v976_v58 = vrot.slane %v975_v24, 4  ;;  %v3744_v9 = vadd.f32 %v931_v26, %v930_v49  ;;  %v3746_v51 = vadd.f32 %v945_v47, %v944_v30  ;;  %v1430_v42 = vpop.f32.mrf.mxu1 }
 0x138   : > { %v956_v8 = vadd.f32 %v955_v11, %v954_v56  ;;  %v970_v22 = vadd.f32 %v969_v15, %v968_v12  ;;  %v3748_v10 = vadd.f32 %v938_v5, %v937_v18  ;;  %v3750_v33 = vadd.f32 %v952_v61, %v951_v3  ;;  %v1269_v44 = vpop.f32.mrf.mxu0 }
 0x139   : > { %4503 = vst [vmem:[#allocation21_spill] sm:$0xff] %v3744_v9  ;;  %4504 = vst [vmem:[#allocation22_spill] sm:$0xff] %v3746_v51  ;;  %v963_v21 = vadd.f32 %v962_v7, %v961_v55  ;;  %v977_v28 = vadd.f32 %v976_v58, %v975_v24  ;;  %v1511_v23 = vmul.f32 %v1255_v14, %v3612_v62  ;;  %v1434_v50 = vpop.f32.mrf.mxu1 }
 0x13a   : > { %4505 = vst [vmem:[#allocation23_spill] sm:$0xff] %v3748_v10  ;;  %4506 = vst [vmem:[#allocation24_spill] sm:$0xff] %v3750_v33  ;;  %v957_v17 = vrot.slane %v956_v8, 2  ;;  %v971_v6 = vrot.slane %v970_v22, 2  ;;  %v1513_v52 = vmul.f32 %v1416_v60, %v3614_v63  ;;  %v1512_v30 = vmul.f32 %v1257_v16, %v3624_v27  ;;  %v1273_v5 = vpop.f32.mrf.mxu0 }
 0x13b   : > { %v964_v46 = vrot.slane %v963_v21, 2  ;;  %v978_v49 = vrot.slane %v977_v28, 2  ;;  %v1514_v56 = vmul.f32 %v1418_v20, %v3626_v31  ;;  %v1515_v3 = vmul.f32 %v1261_v25, %v3628_v1  ;;  %v1436_v24 = vpop.f32.mrf.mxu1 }
 0x13c   : > { %v958_v12 = vadd.f32 %v957_v17, %v956_v8  ;;  %v972_v18 = vadd.f32 %v971_v6, %v970_v22  ;;  %v1517_v55 = vmul.f32 %v1422_v2, %v3630_v35  ;;  %v1516_v14 = vmul.f32 %v1263_v53, %v3632_v36  ;;  %v1275_v11 = vpop.f32.mrf.mxu0 }
 0x13d   : > { %v965_v26 = vadd.f32 %v964_v46, %v963_v21  ;;  %v979_v47 = vadd.f32 %v978_v49, %v977_v28  ;;  %v1518_v60 = vmul.f32 %v1424_v57, %v3635_v41  ;;  %v1575_v16 = vadd.f32 %v1515_v3, %v1511_v23  ;;  %v3760_v20 = vpop.f32.mrf.mxu1 }
 0x13e   : > { %v959_v15 = vrot.slane %v958_v12, 1  ;;  %v973_v61 = vrot.slane %v972_v18, 1  ;;  %v1589_v7 = vadd.f32 %v1517_v55, %v1513_v52  ;;  %v1582_v22 = vadd.f32 %v1516_v14, %v1512_v30  ;;  %v3762_v17 = vpop.f32.mrf.mxu0 }
 0x13f   : > { %v966_v58 = vrot.slane %v965_v26, 1  ;;  %v980_v8 = vrot.slane %v979_v47, 1  ;;  %v1596_v25 = vadd.f32 %v1518_v60, %v1514_v56  ;;  %v1576_v53 = vrot.slane %v1575_v16, 4  ;;  %v3768_v57 = vpop.f32.mrf.mxu1 }
 0x140   : > { %v3764_v2 = vadd.f32 %v959_v15, %v958_v12  ;;  %v3766_v21 = vadd.f32 %v973_v61, %v972_v18  ;;  %v1590_v28 = vrot.slane %v1589_v7, 4  ;;  %v1583_v52 = vrot.slane %v1582_v22, 4  ;;  %v3774_v49 = vpop.f32.mrf.mxu0 }
 0x141   : > { %v3770_v6 = vadd.f32 %v966_v58, %v965_v26  ;;  %v3772_v23 = vadd.f32 %v980_v8, %v979_v47  ;;  %v1597_v46 = vrot.slane %v1596_v25, 4  ;;  %v1577_v30 = vadd.f32 %v1576_v53, %v1575_v16  ;;  %v3778_v18 = vpop.f32.mrf.mxu1 }
 0x142   : > { %4507 = vst [vmem:[#allocation25_spill] sm:$0xff] %v3764_v2  ;;  %4508 = vst [vmem:[#allocation26_spill] sm:$0xff] %v3766_v21  ;;  %v1591_v56 = vadd.f32 %v1590_v28, %v1589_v7  ;;  %v1519_v3 = vmul.f32 %v1267_v43, %v3612_v62  ;;  %v1521_v12 = vmul.f32 %v1428_v13, %v3614_v63  ;;  %v3782_v47 = vpop.f32.mrf.mxu0 }
 0x143   : > { %4509 = vst [vmem:[#allocation27_spill] sm:$0xff] %v3770_v6  ;;  %4510 = vst [vmem:[#allocation28_spill] sm:$0xff] %v3772_v23  ;;  %v1584_v55 = vadd.f32 %v1583_v52, %v1582_v22  ;;  %v1598_v14 = vadd.f32 %v1597_v46, %v1596_v25  ;;  %v1520_v60 = vmul.f32 %v1269_v44, %v3624_v27  ;;  %v1578_v15 = vrot.slane %v1577_v30, 2  ;;  %v3786_v7 = vpop.f32.mrf.mxu1 }
 0x144   : > { %v1522_v26 = vmul.f32 %v1430_v42, %v3626_v31  ;;  %v1592_v61 = vrot.slane %v1591_v56, 2  ;;  %v1523_v58 = vmul.f32 %v1273_v5, %v3628_v1  ;;  %v1525_v16 = vmul.f32 %v1434_v50, %v3630_v35  ;;  %v1287_v25 = vpop.f32.mrf.mxu0 }
 0x145   : > { %v1585_v43 = vrot.slane %v1584_v55, 2  ;;  %v1599_v13 = vrot.slane %v1598_v14, 2  ;;  %v1524_v8 = vmul.f32 %v1275_v11, %v3632_v36  ;;  %v1526_v22 = vmul.f32 %v1436_v24, %v3635_v41  ;;  %v3790_v52 = vpop.f32.mrf.mxu1 }
 0x146   : > { %v1579_v44 = vadd.f32 %v1578_v15, %v1577_v30  ;;  %v1593_v53 = vadd.f32 %v1592_v61, %v1591_v56  ;;  %v1603_v42 = vadd.f32 %v1523_v58, %v1519_v3  ;;  %v1617_v28 = vadd.f32 %v1525_v16, %v1521_v12  ;;  %v3792_v50 = vpop.f32.mrf.mxu0 }
 0x147   : > { %v1586_v46 = vadd.f32 %v1585_v43, %v1584_v55  ;;  %v1600_v23 = vadd.f32 %v1599_v13, %v1598_v14  ;;  %v1610_v5 = vadd.f32 %v1524_v8, %v1520_v60  ;;  %v1624_v6 = vadd.f32 %v1526_v22, %v1522_v26  ;;  %v3794_v11 = vpop.f32.mrf.mxu1 }
 0x148   : > { %v1580_v21 = vrot.slane %v1579_v44, 1  ;;  %v1594_v2 = vrot.slane %v1593_v53, 1  ;;  %v1604_v33 = vrot.slane %v1603_v42, 4  ;;  %v1618_v10 = vrot.slane %v1617_v28, 4  ;;  %v3796_v3 = vpop.f32.mrf.mxu0 }
 0x149   : > { %v1587_v24 = vrot.slane %v1586_v46, 1  ;;  %v1601_v51 = vrot.slane %v1600_v23, 1  ;;  %v1611_v30 = vrot.slane %v1610_v5, 4  ;;  %v1625_v56 = vrot.slane %v1624_v6, 4  ;;  %v3798_v60 = vpop.f32.mrf.mxu1 }
 0x14a   : > { %v1581_v12 = vadd.f32 %v1580_v21, %v1579_v44  ;;  %v1595_v15 = vadd.f32 %v1594_v2, %v1593_v53  ;;  %v1605_v55 = vadd.f32 %v1604_v33, %v1603_v42  ;;  %v1619_v14 = vadd.f32 %v1618_v10, %v1617_v28  ;;  %v3800_v43 = vpop.f32.mrf.mxu0 }
 0x14b   : > { %v1588_v26 = vadd.f32 %v1587_v24, %v1586_v46  ;;  %v1602_v61 = vadd.f32 %v1601_v51, %v1600_v23  ;;  %v1612_v58 = vadd.f32 %v1611_v30, %v1610_v5  ;;  %v1626_v16 = vadd.f32 %v1625_v56, %v1624_v6  ;;  %v3808_v21 = vpop.f32.mrf.mxu1 }
 0x14c   : > { %v3803_v13 = vadd.f32 %v1581_v12, %v3650_v39  ;;  %v3806_v8 = vadd.f32 %v1595_v15, %v3648_v32  ;;  %v1606_v22 = vrot.slane %v1605_v55, 2  ;;  %v1620_v9 = vrot.slane %v1619_v14, 2  ;;  %v1299_v6 = vpop.f32.mrf.mxu0 }
 0x14d   : > { %v3811_v10 = vadd.f32 %v1588_v26, %v3655_v54  ;;  %v3814_v33 = vadd.f32 %v1602_v61, %v3652_v48  ;;  %v1613_v51 = vrot.slane %v1612_v58, 2  ;;  %v1627_v2 = vrot.slane %v1626_v16, 2  ;;  %v3820_v53 = vpop.f32.mrf.mxu1 }
 0x14e   : > { %4511 = vst [vmem:[#allocation29_spill] sm:$0xff] %v3803_v13  ;;  %4512 = vst [vmem:[#allocation30_spill] sm:$0xff] %v3806_v8  ;;  %v1607_v23 = vadd.f32 %v1606_v22, %v1605_v55  ;;  %v1621_v44 = vadd.f32 %v1620_v9, %v1619_v14  ;;  %v1527_v39 = vmul.f32 %v3762_v17, %v3612_v62  ;;  %v3826_v46 = vpop.f32.mrf.mxu0 }
 0x14f   : > { %4513 = vst [vmem:[#allocation31_spill] sm:$0xff] %v3811_v10  ;;  %4514 = vst [vmem:[#allocation32_spill] sm:$0xff] %v3814_v33  ;;  %v1529_v32 = vmul.f32 %v3760_v20, %v3614_v63  ;;  %v1614_v42 = vadd.f32 %v1613_v51, %v1612_v58  ;;  %v1628_v28 = vadd.f32 %v1627_v2, %v1626_v16  ;;  %v3832_v24 = vpop.f32.mrf.mxu1 }
 0x150   : > { %v1528_v54 = vmul.f32 %v3774_v49, %v3624_v27  ;;  %v1530_v48 = vmul.f32 %v3768_v57, %v3626_v31  ;;  %v1608_v5 = vrot.slane %v1607_v23, 1  ;;  %v1622_v9 = vrot.slane %v1621_v44, 1  ;;  %v3837_v57 = vpop.f32.mrf.mxu0 }
 0x151   : > { %v1531_v17 = vmul.f32 %v3782_v47, %v3628_v1  ;;  %v1533_v20 = vmul.f32 %v3778_v18, %v3630_v35  ;;  %v1615_v30 = vrot.slane %v1614_v42, 1  ;;  %v1629_v56 = vrot.slane %v1628_v28, 1  ;;  %v3839_v61 = vpop.f32.mrf.mxu1 }
 0x152   : > { %v1532_v12 = vmul.f32 %v1287_v25, %v3632_v36  ;;  %v1534_v49 = vmul.f32 %v3786_v7, %v3635_v41  ;;  %v1609_v15 = vadd.f32 %v1608_v5, %v1607_v23  ;;  %v1623_v55 = vadd.f32 %v1622_v9, %v1621_v44  ;;  %v3841_v22 = vpop.f32.mrf.mxu0 }
 0x153   : > { %v1631_v14 = vadd.f32 %v1531_v17, %v1527_v39  ;;  %v1645_v26 = vadd.f32 %v1533_v20, %v1529_v32  ;;  %v1616_v47 = vadd.f32 %v1615_v30, %v1614_v42  ;;  %v1630_v58 = vadd.f32 %v1629_v56, %v1628_v28  ;;  %v3849_v23 = vpop.f32.mrf.mxu1 }
 0x154   : > { %v1638_v18 = vadd.f32 %v1532_v12, %v1528_v54  ;;  %v1652_v16 = vadd.f32 %v1534_v49, %v1530_v48  ;;  %v3844_v51 = vadd.f32 %v1609_v15, %v3666_v38  ;;  %v3847_v25 = vadd.f32 %v1623_v55, %v3664_v29  ;;  %v3857_v28 = vpop.f32.mrf.mxu0 }
 0x155   : > { %v1632_v7 = vrot.slane %v1631_v14, 4  ;;  %v1646_v2 = vrot.slane %v1645_v26, 4  ;;  %v3852_v44 = vadd.f32 %v1616_v47, %v3671_v59  ;;  %v3855_v39 = vadd.f32 %v1630_v58, %v3668_v45  ;;  %v3863_v5 = vpop.f32.mrf.mxu1 }
 0x156   : > { %4515 = vst [vmem:[#allocation33_spill] sm:$0xff] %v3844_v51  ;;  %4516 = vst [vmem:[#allocation34_spill] sm:$0xff] %v3847_v25  ;;  %v1639_v32 = vrot.slane %v1638_v18, 4  ;;  %v1653_v42 = vrot.slane %v1652_v16, 4  ;;  %v1535_v29 = vmul.f32 %v3792_v50, %v3612_v62  ;;  %v1537_v48 = vmul.f32 %v3790_v52, %v3614_v63  ;;  %v3869_v20 = vpop.f32.mrf.mxu0 }
 0x157   : > { %4517 = vst [vmem:[#allocation35_spill] sm:$0xff] %v3852_v44  ;;  %4518 = vst [vmem:[#allocation36_spill] sm:$0xff] %v3855_v39  ;;  %v1633_v54 = vadd.f32 %v1632_v7, %v1631_v14  ;;  %v1647_v38 = vadd.f32 %v1646_v2, %v1645_v26  ;;  %v1536_v45 = vmul.f32 %v3796_v3, %v3624_v27  ;;  %v3875_v12 = vpop.f32.mrf.mxu1 }
 0x158   : > { %v1640_v9 = vadd.f32 %v1639_v32, %v1638_v18  ;;  %v1654_v59 = vadd.f32 %v1653_v42, %v1652_v16  ;;  %v1538_v17 = vmul.f32 %v3794_v11, %v3626_v31  ;;  %v1539_v50 = vmul.f32 %v3800_v43, %v3628_v1  ;;  %v3880_v11 = vpop.f32.mrf.mxu0 }
 0x159   : > { %v1634_v30 = vrot.slane %v1633_v54, 2  ;;  %v1648_v56 = vrot.slane %v1647_v38, 2  ;;  %v1541_v52 = vmul.f32 %v3798_v60, %v3630_v35  ;;  %v1540_v55 = vmul.f32 %v1299_v6, %v3632_v36  ;;  %v3882_v18 = vpop.f32.mrf.mxu1 }
 0x15a   : > { %v1641_v49 = vrot.slane %v1640_v9, 2  ;;  %v1655_v15 = vrot.slane %v1654_v59, 2  ;;  %v1542_v3 = vmul.f32 %v3808_v21, %v3635_v41  ;;  %v1659_v47 = vadd.f32 %v1539_v50, %v1535_v29  ;;  %v3884_v2 = vpop.f32.mrf.mxu0 }
 0x15b   : > { %v1635_v14 = vadd.f32 %v1634_v30, %v1633_v54  ;;  %v1649_v26 = vadd.f32 %v1648_v56, %v1647_v38  ;;  %v1673_v58 = vadd.f32 %v1541_v52, %v1537_v48  ;;  %v1666_v60 = vadd.f32 %v1540_v55, %v1536_v45  ;;  %v3886_v44 = vpop.f32.mrf.mxu1 }
 0x15c   : > { %v1642_v43 = vadd.f32 %v1641_v49, %v1640_v9  ;;  %v1656_v16 = vadd.f32 %v1655_v15, %v1654_v59  ;;  %v1680_v7 = vadd.f32 %v1542_v3, %v1538_v17  ;;  %v1660_v6 = vrot.slane %v1659_v47, 4  ;;  %v3888_v29 = vpop.f32.mrf.mxu0  ;;  %v4519_v15 = vld [vmem:[#allocation11_spill] sm:$0xff]  ;;  %v4521_v3 = vld [vmem:[#allocation12_spill] sm:$0xff] }
 0x15d   : > { %v1636_v32 = vrot.slane %v1635_v14, 1  ;;  %v1650_v42 = vrot.slane %v1649_v26, 1  ;;  %v1674_v39 = vrot.slane %v1673_v58, 4  ;;  %v1667_v54 = vrot.slane %v1666_v60, 4  ;;  %v3890_v45 = vpop.f32.mrf.mxu1 }
 0x15e   : > { %v1643_v21 = vrot.slane %v1642_v43, 1  ;;  %v1657_v33 = vrot.slane %v1656_v16, 1  ;;  %v1681_v38 = vrot.slane %v1680_v7, 4  ;;  %v1661_v9 = vadd.f32 %v1660_v6, %v1659_v47  ;;  %v3892_v49 = vpop.f32.mrf.mxu0  ;;  %v4525_v47 = vld [vmem:[#allocation14_spill] sm:$0xff] }
 0x15f   : > { %v1637_v48 = vadd.f32 %v1636_v32, %v1635_v14  ;;  %v1651_v30 = vadd.f32 %v1650_v42, %v1649_v26  ;;  %v1675_v59 = vadd.f32 %v1674_v39, %v1673_v58  ;;  %v1668_v50 = vadd.f32 %v1667_v54, %v1666_v60  ;;  %v3900_v14 = vpop.f32.mrf.mxu1  ;;  %v4523_v26 = vld [vmem:[#allocation13_spill] sm:$0xff] }
 0x160   : > { %v1644_v17 = vadd.f32 %v1643_v21, %v1642_v43  ;;  %v1658_v56 = vadd.f32 %v1657_v33, %v1656_v16  ;;  %v1682_v52 = vadd.f32 %v1681_v38, %v1680_v7  ;;  %v1662_v25 = vrot.slane %v1661_v9, 2  ;;  %v3908_v16 = vpop.f32.mrf.mxu0 }
 0x161   : > { %v3895_v55 = vadd.f32 %v1637_v48, %v4519_v15  ;;  %v3898_v10 = vadd.f32 %v1651_v30, %v4521_v3  ;;  %v1676_v51 = vrot.slane %v1675_v59, 2  ;;  %v1669_v33 = vrot.slane %v1668_v50, 2  ;;  %v3914_v6 = vpop.f32.mrf.mxu1 }
 0x162   : > { %v3903_v39 = vadd.f32 %v1644_v17, %v4523_v26  ;;  %v3906_v58 = vadd.f32 %v1658_v56, %v4525_v47  ;;  %v1683_v43 = vrot.slane %v1682_v52, 2  ;;  %v1663_v60 = vadd.f32 %v1662_v25, %v1661_v9  ;;  %v3920_v30 = vpop.f32.mrf.mxu0 }
 0x163   : > { %4520 = vst [vmem:[#allocation11_spill] sm:$0xff] %v3895_v55  ;;  %4522 = vst [vmem:[#allocation12_spill] sm:$0xff] %v3898_v10  ;;  %v1677_v7 = vadd.f32 %v1676_v51, %v1675_v59  ;;  %v1543_v32 = vmul.f32 %v3826_v46, %v3612_v62  ;;  %v1545_v42 = vmul.f32 %v3820_v53, %v3614_v63  ;;  %v3926_v9 = vpop.f32.mrf.mxu1 }
 0x164   : > { %4524 = vst [vmem:[#allocation13_spill] sm:$0xff] %v3903_v39  ;;  %4526 = vst [vmem:[#allocation14_spill] sm:$0xff] %v3906_v58  ;;  %v1670_v21 = vadd.f32 %v1669_v33, %v1668_v50  ;;  %v1684_v54 = vadd.f32 %v1683_v43, %v1682_v52  ;;  %v1544_v38 = vmul.f32 %v3837_v57, %v3624_v27  ;;  %v1664_v25 = vrot.slane %v1663_v60, 1  ;;  %v3932_v56 = vpop.f32.mrf.mxu0  ;;  %v4527_v58 = vld [vmem:[#allocation15_spill] sm:$0xff] }
 0x165   : > { %v1546_v48 = vmul.f32 %v3832_v24, %v3626_v31  ;;  %v1678_v51 = vrot.slane %v1677_v7, 1  ;;  %v1547_v46 = vmul.f32 %v3841_v22, %v3628_v1  ;;  %v1549_v53 = vmul.f32 %v3839_v61, %v3630_v35  ;;  %v3934_v22 = vpop.f32.mrf.mxu1 }
 0x166   : > { %v1671_v59 = vrot.slane %v1670_v21, 1  ;;  %v1685_v17 = vrot.slane %v1684_v54, 1  ;;  %v1548_v57 = vmul.f32 %v3857_v28, %v3632_v36  ;;  %v1550_v24 = vmul.f32 %v3849_v23, %v3635_v41  ;;  %v3936_v43 = vpop.f32.mrf.mxu0  ;;  %v4529_v28 = vld [vmem:[#allocation16_spill] sm:$0xff] }
 0x167   : > { %v1665_v50 = vadd.f32 %v1664_v25, %v1663_v60  ;;  %v1679_v52 = vadd.f32 %v1678_v51, %v1677_v7  ;;  %v1687_v15 = vadd.f32 %v1547_v46, %v1543_v32  ;;  %v1701_v3 = vadd.f32 %v1549_v53, %v1545_v42  ;;  %v3944_v60 = vpop.f32.mrf.mxu1  ;;  %v4531_v7 = vld [vmem:[#allocation17_spill] sm:$0xff]  ;;  %v4533_v42 = vld [vmem:[#allocation18_spill] sm:$0xff] }
 0x168   : > { %v1672_v26 = vadd.f32 %v1671_v59, %v1670_v21  ;;  %v1686_v61 = vadd.f32 %v1685_v17, %v1684_v54  ;;  %v1694_v47 = vadd.f32 %v1548_v57, %v1544_v38  ;;  %v1708_v33 = vadd.f32 %v1550_v24, %v1546_v48  ;;  %v3952_v48 = vpop.f32.mrf.mxu0 }
 0x169   : > { %v3939_v39 = vadd.f32 %v1665_v50, %v4527_v58  ;;  %v3942_v10 = vadd.f32 %v1679_v52, %v4529_v28  ;;  %v1688_v23 = vrot.slane %v1687_v15, 4  ;;  %v1702_v55 = vrot.slane %v1701_v3, 4  ;;  %v3958_v53 = vpop.f32.mrf.mxu1 }
 0x16a   : > { %v3947_v32 = vadd.f32 %v1672_v26, %v4531_v7  ;;  %v3950_v21 = vadd.f32 %v1686_v61, %v4533_v42  ;;  %v1695_v54 = vrot.slane %v1694_v47, 4  ;;  %v1709_v38 = vrot.slane %v1708_v33, 4  ;;  %v3964_v50 = vpop.f32.mrf.mxu0 }
 0x16b   : > { %4528 = vst [vmem:[#allocation15_spill] sm:$0xff] %v3939_v39  ;;  %4530 = vst [vmem:[#allocation16_spill] sm:$0xff] %v3942_v10  ;;  %v1689_v25 = vadd.f32 %v1688_v23, %v1687_v15  ;;  %v1703_v58 = vadd.f32 %v1702_v55, %v1701_v3  ;;  %v1551_v51 = vmul.f32 %v3869_v20, %v3612_v62  ;;  %v3970_v15 = vpop.f32.mrf.mxu1 }
 0x16c   : > { %4532 = vst [vmem:[#allocation17_spill] sm:$0xff] %v3947_v32  ;;  %4534 = vst [vmem:[#allocation18_spill] sm:$0xff] %v3950_v21  ;;  %v1553_v46 = vmul.f32 %v3863_v5, %v3614_v63  ;;  %v1696_v59 = vadd.f32 %v1695_v54, %v1694_v47  ;;  %v1710_v17 = vadd.f32 %v1709_v38, %v1708_v33  ;;  %v3976_v61 = vpop.f32.mrf.mxu0 }
 0x16d   : > { %v1552_v57 = vmul.f32 %v3880_v11, %v3624_v27  ;;  %v1554_v24 = vmul.f32 %v3875_v12, %v3626_v31  ;;  %v1690_v52 = vrot.slane %v1689_v25, 2  ;;  %v1704_v55 = vrot.slane %v1703_v58, 2 }
 0x16e   : > { %v1555_v20 = vmul.f32 %v3884_v2, %v3628_v1  ;;  %v1557_v5 = vmul.f32 %v3882_v18, %v3630_v35  ;;  %v1697_v3 = vrot.slane %v1696_v59, 2  ;;  %v1711_v26 = vrot.slane %v1710_v17, 2  ;;  %v3978_v2 = vpop.f32.mrf.mxu1  ;;  %v3980_v38 = vpop.f32.mrf.mxu0 }
 0x16f   : > { %v1556_v11 = vmul.f32 %v3888_v29, %v3632_v36  ;;  %v1558_v12 = vmul.f32 %v3886_v44, %v3635_v41  ;;  %v1691_v47 = vadd.f32 %v1690_v52, %v1689_v25  ;;  %v1705_v33 = vadd.f32 %v1704_v55, %v1703_v58 }
 0x170   : > { %v1715_v28 = vadd.f32 %v1555_v20, %v1551_v51  ;;  %v1729_v23 = vadd.f32 %v1557_v5, %v1553_v46  ;;  %v1698_v7 = vadd.f32 %v1697_v3, %v1696_v59  ;;  %v1712_v18 = vadd.f32 %v1711_v26, %v1710_v17  ;;  %v3982_v39 = vpop.f32.mrf.mxu1  ;;  %v3984_v51 = vpop.f32.mrf.mxu0 }
 0x171   : > { %v1722_v42 = vadd.f32 %v1556_v11, %v1552_v57  ;;  %v1736_v54 = vadd.f32 %v1558_v12, %v1554_v24  ;;  %v1692_v21 = vrot.slane %v1691_v47, 1  ;;  %v1706_v32 = vrot.slane %v1705_v33, 1 }
 0x172   : > { %v1716_v29 = vrot.slane %v1715_v28, 4  ;;  %v1730_v10 = vrot.slane %v1729_v23, 4  ;;  %v1699_v44 = vrot.slane %v1698_v7, 1  ;;  %v1713_v8 = vrot.slane %v1712_v18, 1  ;;  %v3986_v57 = vpop.f32.mrf.mxu1  ;;  %v3988_v3 = vpop.f32.mrf.mxu0 }
 0x173   : > { %v1723_v25 = vrot.slane %v1722_v42, 4  ;;  %v1737_v58 = vrot.slane %v1736_v54, 4  ;;  %v1693_v46 = vadd.f32 %v1692_v21, %v1691_v47  ;;  %v1707_v52 = vadd.f32 %v1706_v32, %v1705_v33 }
 0x174   : > { %v1717_v59 = vadd.f32 %v1716_v29, %v1715_v28  ;;  %v1731_v17 = vadd.f32 %v1730_v10, %v1729_v23  ;;  %v1700_v24 = vadd.f32 %v1699_v44, %v1698_v7  ;;  %v1714_v55 = vadd.f32 %v1713_v8, %v1712_v18  ;;  %v3996_v21 = vpop.f32.mrf.mxu1  ;;  %v4004_v33 = vpop.f32.mrf.mxu0 }
 0x175   : > { %v1724_v20 = vadd.f32 %v1723_v25, %v1722_v42  ;;  %v1738_v5 = vadd.f32 %v1737_v58, %v1736_v54  ;;  %v3991_v26 = vadd.f32 %v1693_v46, %v3712_v4  ;;  %v3994_v11 = vadd.f32 %v1707_v52, %v3714_v37 }
 0x176   : > { %v1718_v12 = vrot.slane %v1717_v59, 2  ;;  %v1732_v13 = vrot.slane %v1731_v17, 2  ;;  %v3999_v10 = vadd.f32 %v1700_v24, %v3716_v34  ;;  %v4002_v32 = vadd.f32 %v1714_v55, %v3718_v19  ;;  %v4010_v7 = vpop.f32.mrf.mxu1  ;;  %v4016_v54 = vpop.f32.mrf.mxu0 }
 0x177   : > { %4535 = vst [vmem:[#allocation37_spill] sm:$0xff] %v3991_v26  ;;  %4536 = vst [vmem:[#allocation38_spill] sm:$0xff] %v3994_v11  ;;  %v1725_v8 = vrot.slane %v1724_v20, 2  ;;  %v1739_v47 = vrot.slane %v1738_v5, 2  ;;  %v1559_v37 = vmul.f32 %v3892_v49, %v3612_v62  ;;  %v1561_v23 = vmul.f32 %v3890_v45, %v3614_v63  ;;  %v4571_v11 = vld [vmem:[#allocation31_spill] sm:$0xff] }
 0x178   : > { %4537 = vst [vmem:[#allocation39_spill] sm:$0xff] %v3999_v10  ;;  %4538 = vst [vmem:[#allocation40_spill] sm:$0xff] %v4002_v32  ;;  %v1719_v28 = vadd.f32 %v1718_v12, %v1717_v59  ;;  %v1733_v4 = vadd.f32 %v1732_v13, %v1731_v17  ;;  %v1560_v19 = vmul.f32 %v3908_v16, %v3624_v27  ;;  %v4022_v44 = vpop.f32.mrf.mxu1  ;;  %v4028_v46 = vpop.f32.mrf.mxu0 }
 0x179   : > { %v1726_v18 = vadd.f32 %v1725_v8, %v1724_v20  ;;  %v1740_v34 = vadd.f32 %v1739_v47, %v1738_v5  ;;  %v1562_v42 = vmul.f32 %v3900_v14, %v3626_v31  ;;  %v1563_v49 = vmul.f32 %v3920_v30, %v3628_v1 }
 0x17a   : > { %v1720_v29 = vrot.slane %v1719_v28, 1  ;;  %v1734_v13 = vrot.slane %v1733_v4, 1  ;;  %v1565_v45 = vmul.f32 %v3914_v6, %v3630_v35  ;;  %v1564_v16 = vmul.f32 %v3932_v56, %v3632_v36  ;;  %v4030_v30 = vpop.f32.mrf.mxu1  ;;  %v4032_v12 = vpop.f32.mrf.mxu0 }
 0x17b   : > { %v1727_v25 = vrot.slane %v1726_v18, 1  ;;  %v1741_v58 = vrot.slane %v1740_v34, 1  ;;  %v1566_v14 = vmul.f32 %v3926_v9, %v3635_v41  ;;  %v1743_v17 = vadd.f32 %v1563_v49, %v1559_v37 }
 0x17c   : > { %v1721_v52 = vadd.f32 %v1720_v29, %v1719_v28  ;;  %v1735_v59 = vadd.f32 %v1734_v13, %v1733_v4  ;;  %v1757_v24 = vadd.f32 %v1565_v45, %v1561_v23  ;;  %v1750_v20 = vadd.f32 %v1564_v16, %v1560_v19  ;;  %v4040_v28 = vpop.f32.mrf.mxu1  ;;  %v4541_v4 = vld [vmem:[#allocation19_spill] sm:$0xff]  ;;  %v4543_v23 = vld [vmem:[#allocation20_spill] sm:$0xff] }
 0x17d   : > { %v1728_v55 = vadd.f32 %v1727_v25, %v1726_v18  ;;  %v1742_v6 = vadd.f32 %v1741_v58, %v1740_v34  ;;  %v1764_v5 = vadd.f32 %v1566_v14, %v1562_v42  ;;  %v1744_v9 = vrot.slane %v1743_v17, 4  ;;  %v4048_v42 = vpop.f32.mrf.mxu0 }
 0x17e   : > { %v4035_v8 = vadd.f32 %v1721_v52, %v3728_v0  ;;  %v4038_v56 = vadd.f32 %v1735_v59, %v3730_v40  ;;  %v1758_v47 = vrot.slane %v1757_v24, 4  ;;  %v1751_v34 = vrot.slane %v1750_v20, 4 }
 0x17f   : > { %v4043_v37 = vadd.f32 %v1728_v55, %v4541_v4  ;;  %v4046_v18 = vadd.f32 %v1742_v6, %v4543_v23  ;;  %v1765_v19 = vrot.slane %v1764_v5, 4  ;;  %v1745_v29 = vadd.f32 %v1744_v9, %v1743_v17  ;;  %v4058_v16 = vpop.f32.mrf.mxu0 }
 0x180   : > { %4539 = vst [vmem:[#allocation41_spill] sm:$0xff] %v4035_v8  ;;  %4540 = vst [vmem:[#allocation42_spill] sm:$0xff] %v4038_v56  ;;  %v1759_v0 = vadd.f32 %v1758_v47, %v1757_v24  ;;  %v1567_v40 = vmul.f32 %v3936_v43, %v3612_v62  ;;  %v1569_v13 = vmul.f32 %v3934_v22, %v3614_v63  ;;  %v4064_v43 = vpop.f32.mrf.mxu1 }
 0x181   : > { %4542 = vst [vmem:[#allocation19_spill] sm:$0xff] %v4043_v37  ;;  %4544 = vst [vmem:[#allocation20_spill] sm:$0xff] %v4046_v18  ;;  %v1752_v49 = vadd.f32 %v1751_v34, %v1750_v20  ;;  %v1766_v45 = vadd.f32 %v1765_v19, %v1764_v5  ;;  %v1568_v25 = vmul.f32 %v3952_v48, %v3624_v27  ;;  %v1746_v14 = vrot.slane %v1745_v29, 2  ;;  %v4070_v20 = vpop.f32.mrf.mxu0 }
 0x182   : > { %v1570_v58 = vmul.f32 %v3944_v60, %v3626_v31  ;;  %v1760_v52 = vrot.slane %v1759_v0, 2  ;;  %v1571_v59 = vmul.f32 %v3964_v50, %v3628_v1  ;;  %v1573_v62 = vmul.f32 %v3958_v53, %v3630_v35  ;;  %v4072_v47 = vpop.f32.mrf.mxu1 }
 0x183   : > { %v1753_v63 = vrot.slane %v1752_v49, 2  ;;  %v1767_v22 = vrot.slane %v1766_v45, 2  ;;  %v1572_v27 = vmul.f32 %v3976_v61, %v3632_v36  ;;  %v1574_v31 = vmul.f32 %v3970_v15, %v3635_v41 }
 0x184   : > { %v1747_v60 = vadd.f32 %v1746_v14, %v1745_v29  ;;  %v1761_v48 = vadd.f32 %v1760_v52, %v1759_v0  ;;  %v1771_v17 = vadd.f32 %v1571_v59, %v1567_v40  ;;  %v1785_v24 = vadd.f32 %v1573_v62, %v1569_v13  ;;  %v4082_v62 = vpop.f32.mrf.mxu1 }
 0x185   : > { %v1754_v55 = vadd.f32 %v1753_v63, %v1752_v49  ;;  %v1768_v6 = vadd.f32 %v1767_v22, %v1766_v45  ;;  %v1778_v1 = vadd.f32 %v1572_v27, %v1568_v25  ;;  %v1792_v50 = vadd.f32 %v1574_v31, %v1570_v58  ;;  %v4074_v49 = vpop.f32.mrf.mxu0  ;;  %v4545_v45 = vld [vmem:[#allocation21_spill] sm:$0xff]  ;;  %v4547_v58 = vld [vmem:[#allocation22_spill] sm:$0xff]  ;;  %v4549_v63 = vld [vmem:[#allocation23_spill] sm:$0xff] }
 0x186   : > { %v1748_v35 = vrot.slane %v1747_v60, 1  ;;  %v1762_v53 = vrot.slane %v1761_v48, 1  ;;  %v1772_v5 = vrot.slane %v1771_v17, 4  ;;  %v1786_v9 = vrot.slane %v1785_v24, 4  ;;  %v4551_v27 = vld [vmem:[#allocation24_spill] sm:$0xff] }
 0x187   : > { %v1755_v36 = vrot.slane %v1754_v55, 1  ;;  %v1769_v61 = vrot.slane %v1768_v6, 1  ;;  %v1779_v4 = vrot.slane %v1778_v1, 4  ;;  %v1793_v41 = vrot.slane %v1792_v50, 4 }
 0x188   : > { %v1749_v15 = vadd.f32 %v1748_v35, %v1747_v60  ;;  %v1763_v23 = vadd.f32 %v1762_v53, %v1761_v48  ;;  %v1773_v34 = vadd.f32 %v1772_v5, %v1771_v17  ;;  %v1787_v19 = vadd.f32 %v1786_v9, %v1785_v24  ;;  %v4555_v35 = vld [vmem:[#allocation7_spill] sm:$0xff] }
 0x189   : > { %v1756_v29 = vadd.f32 %v1755_v36, %v1754_v55  ;;  %v1770_v0 = vadd.f32 %v1769_v61, %v1768_v6  ;;  %v1780_v40 = vadd.f32 %v1779_v4, %v1778_v1  ;;  %v1794_v13 = vadd.f32 %v1793_v41, %v1792_v50  ;;  %v4553_v55 = vld [vmem:[#allocation9_spill] sm:$0xff]  ;;  %v4554_v6 = vld [vmem:[#allocation10_spill] sm:$0xff] }
 0x18a   : > { %v4077_v25 = vadd.f32 %v1749_v15, %v4545_v45  ;;  %v4080_v14 = vadd.f32 %v1763_v23, %v4547_v58  ;;  %v1774_v52 = vrot.slane %v1773_v34, 2  ;;  %v1788_v59 = vrot.slane %v1787_v19, 2  ;;  %v3053_v50 = vld [vmem:[%s3259_s8 + $0x5] ss:$8 sm:$0xf]  ;;  %v4096_v15 = vpop.f32.mrf.mxu0  ;;  %s3149_s8 = smov [#allocation2]  }
 0x18b   : > { %v4085_v22 = vadd.f32 %v1756_v29, %v4549_v63  ;;  %v4088_v31 = vadd.f32 %v1770_v0, %v4551_v27  ;;  %v1781_v60 = vrot.slane %v1780_v40, 2  ;;  %v1795_v48 = vrot.slane %v1794_v13, 2  ;;  %v4556_v36 = vld [vmem:[#allocation5_spill] sm:$0xff]  ;;  %v4557_v4 = vld [vmem:[#allocation6_spill] sm:$0xff]  ;;  %s3058_s12 = sshll.u32 %s3149_s8, 4  ;;  %s3059_s12 = int_to_ptr.vmem [resolvable:$false] %s3058_s12 }
 0x18c   : > { %4546 = vst [vmem:[#allocation21_spill] sm:$0xff] %v4077_v25  ;;  %4548 = vst [vmem:[#allocation22_spill] sm:$0xff] %v4080_v14  ;;  %v1775_v17 = vadd.f32 %v1774_v52, %v1773_v34  ;;  %v1789_v24 = vadd.f32 %v1788_v59, %v1787_v19  ;;  %v1909_v1 = vsub.f32 %v4554_v6, %v4553_v55  ;;  %v4099_v19 = vpop.f32.mrf.mxu1  ;;  %s3060_s17 = scalar_lea.vmem %s3059_s12, 1024  ;;  %p3061_p4 = scmp.lt.s32.totalorder %s4421_s30, %s3059_s12 }
 0x18d   : > { %4550 = vst [vmem:[#allocation23_spill] sm:$0xff] %v4085_v22  ;;  %4552 = vst [vmem:[#allocation24_spill] sm:$0xff] %v4088_v31  ;;  %v1900_v53 = vrot.slane %v3053_v50, %v4555_v35  ;;  %v1782_v5 = vadd.f32 %v1781_v60, %v1780_v40  ;;  %v1796_v9 = vadd.f32 %v1795_v48, %v1794_v13  ;;  %v4560_v31 = vld [vmem:[#allocation26_spill] sm:$0xff]  ;;  %p3062_p5 = scmp.lt.s32.totalorder %s3060_s17, %s3054_s7 }
 0x18e   : > { %v1896_v61 = vrot.slane %v3053_v50, %v4556_v36  ;;  %v1904_v41 = vrot.slane %v3053_v50, %v4557_v4  ;;  %v1776_v23 = vrot.slane %v1775_v17, 1  ;;  %v1790_v29 = vrot.slane %v1789_v24, 1  ;;  %v4103_v36 = vpop.f32.mrf.mxu0 }
 0x18f   : > { %v1917_v0 = vand.u32 2147483647, %v1909_v1  ;;  %v1911_v34 = vsub.f32 %v1900_v53, %v4553_v55  ;;  %v1783_v45 = vrot.slane %v1782_v5, 1  ;;  %v1797_v58 = vrot.slane %v1796_v9, 1  ;;  %v4558_v1 = vld [vmem:[#allocation25_spill] sm:$0xff]  ;;  %p3063_p6 = por %p3062_p5, %p3061_p4 }
 0x190   : > { %v1910_v52 = vsub.f32 %v1896_v61, %v4553_v55  ;;  %v1912_v40 = vsub.f32 %v1904_v41, %v4553_v55  ;;  %v1777_v13 = vadd.f32 %v1776_v23, %v1775_v17  ;;  %v1791_v59 = vadd.f32 %v1790_v29, %v1789_v24  ;;  %v4113_v55 = vpop.f32.mrf.mxu1  ;;  %v4562_v17 = vld [vmem:[#allocation27_spill] sm:$0xff] }
 0x191   : > { %v1925_v63 = vsub.f32 1.0, %v1917_v0  ;;  %v1919_v27 = vand.u32 2147483647, %v1911_v34  ;;  %v1784_v60 = vadd.f32 %v1783_v45, %v1782_v5  ;;  %v1798_v48 = vadd.f32 %v1797_v58, %v1796_v9  ;;  %v4564_v5 = vld [vmem:[#allocation28_spill] sm:$0xff]  ;;  %p3064_p7 = pnand %p3063_p6, %p3057_p2 }
 0x192   : > { %v1918_v50 = vand.u32 2147483647, %v1910_v52  ;;  %v1920_v35 = vand.u32 2147483647, %v1912_v40  ;;  %v4106_v4 = vadd.f32 %v1777_v13, %v4558_v1  ;;  %v4109_v22 = vadd.f32 %v1791_v59, %v4560_v31  ;;  %v4566_v34 = vld [vmem:[#allocation8_spill] sm:$0xff]  ;;  %v4132_v59 = vpop.f32.mrf.mxu0 }
 0x193   : > { %v4111_v14 = vmax.f32 %v1925_v63, 0.0  ;;  %v1927_v25 = vsub.f32 1.0, %v1919_v27  ;;  %v4116_v24 = vadd.f32 %v1784_v60, %v4562_v17  ;;  %v4119_v9 = vadd.f32 %v1798_v48, %v4564_v5  ;;  %v4134_v60 = vpop.f32.mrf.mxu1 }
 0x194   : > { %4559 = vst [vmem:[#allocation9_spill] sm:$0xff] %v4106_v4  ;;  %4561 = vst [vmem:[#allocation10_spill] sm:$0xff] %v4109_v22  ;;  %v1926_v23 = vsub.f32 1.0, %v1918_v50  ;;  %v1928_v29 = vsub.f32 1.0, %v1920_v35  ;;  %v1913_v45 = vsub.f32 %v4554_v6, %v4566_v34  ;;  %v1915_v31 = vsub.f32 %v1900_v53, %v4566_v34 }
 0x195   : > { %4563 = vst [vmem:[#allocation7_spill] sm:$0xff] %v4116_v24  ;;  %4565 = vst [vmem:[#allocation5_spill] sm:$0xff] %v4119_v9  ;;  %v4121_v0 = vmax.f32 %v1927_v25, 0.0  ;;  %v1914_v40 = vsub.f32 %v1896_v61, %v4566_v34  ;;  %v1916_v13 = vsub.f32 %v1904_v41, %v4566_v34  ;;  %v2328_v25 = vmul.f32 %v3980_v38, %v4111_v14  ;;  %v4158_v34 = vpop.f32.mrf.mxu1 }
 0x196   : > { %v4126_v58 = vmax.f32 %v1926_v23, 0.0  ;;  %v4128_v52 = vmax.f32 %v1928_v29, 0.0  ;;  %v1921_v63 = vand.u32 2147483647, %v1913_v45  ;;  %v1923_v27 = vand.u32 2147483647, %v1915_v31  ;;  %v4148_v23 = vpop.f32.mrf.mxu0 }
 0x197   : > { %v2330_v6 = vmul.f32 %v3978_v2, %v4121_v0  ;;  %v1922_v53 = vand.u32 2147483647, %v1914_v40  ;;  %v1924_v48 = vand.u32 2147483647, %v1916_v13  ;;  %v2336_v41 = vmul.f32 %v4016_v54, %v4111_v14 }
 0x198   : > { %v2329_v50 = vmul.f32 %v3984_v51, %v4126_v58  ;;  %v1929_v61 = vsub.f32 1.0, %v1921_v63  ;;  %v1931_v35 = vsub.f32 1.0, %v1923_v27  ;;  %v2331_v1 = vmul.f32 %v3982_v39, %v4128_v52  ;;  %v4188_v27 = vpop.f32.mrf.mxu0 }
 0x199   : > { %v1930_v17 = vsub.f32 1.0, %v1922_v53  ;;  %v1932_v5 = vsub.f32 1.0, %v1924_v48  ;;  %v2338_v38 = vmul.f32 %v4010_v7, %v4121_v0  ;;  %v2337_v51 = vmul.f32 %v4028_v46, %v4126_v58 }
 0x19a   : > { %v4150_v2 = vmax.f32 %v1929_v61, 0.0  ;;  %v4152_v29 = vmax.f32 %v1931_v35, 0.0  ;;  %v2339_v54 = vmul.f32 %v4022_v44, %v4128_v52  ;;  %v4166_v7 = vmul.f32 %v4058_v16, %v4111_v14  ;;  %v4190_v61 = vpop.f32.mrf.mxu1  ;;  %v4192_v18 = vpop.f32.mrf.mxu0 }
 0x19b   : > { %v4160_v39 = vmax.f32 %v1930_v17, 0.0  ;;  %v4162_v45 = vmax.f32 %v1932_v5, 0.0  ;;  %v4170_v31 = vmul.f32 %v4064_v43, %v4121_v0 }
 0x19c   : > { %v2332_v46 = vmul.f32 %v3988_v3, %v4150_v2  ;;  %v2334_v44 = vmul.f32 %v3986_v57, %v4152_v29  ;;  %v2340_v40 = vmul.f32 %v4032_v12, %v4150_v2  ;;  %v2342_v13 = vmul.f32 %v4030_v30, %v4152_v29  ;;  %v4196_v56 = vpop.f32.mrf.mxu0 }
 0x19d   : > { %v2333_v16 = vmul.f32 %v4004_v33, %v4160_v39  ;;  %v2335_v63 = vmul.f32 %v3996_v21, %v4162_v45  ;;  %v2341_v43 = vmul.f32 %v4048_v42, %v4160_v39  ;;  %v2343_v3 = vmul.f32 %v4040_v28, %v4162_v45 }
 0x19e   : > { %v2392_v57 = vadd.f32 %v2332_v46, %v2328_v25  ;;  %v2406_v53 = vadd.f32 %v2334_v44, %v2330_v6  ;;  %v2420_v12 = vadd.f32 %v2340_v40, %v2336_v41  ;;  %v2434_v48 = vadd.f32 %v2342_v13, %v2338_v38  ;;  %v4194_v46 = vpop.f32.mrf.mxu1  ;;  %v4200_v32 = vpop.f32.mrf.mxu0 }
 0x19f   : > { %v2399_v30 = vadd.f32 %v2333_v16, %v2329_v50  ;;  %v2413_v35 = vadd.f32 %v2335_v63, %v2331_v1  ;;  %v2427_v33 = vadd.f32 %v2341_v43, %v2337_v51  ;;  %v2441_v17 = vadd.f32 %v2343_v3, %v2339_v54 }
 0x1a0   : > { %v2393_v5 = vrot.slane %v2392_v57, 4  ;;  %v2407_v21 = vrot.slane %v2406_v53, 4  ;;  %v2421_v9 = vrot.slane %v2420_v12, 4  ;;  %v2435_v24 = vrot.slane %v2434_v48, 4 }
 0x1a1   : > { %v2400_v42 = vrot.slane %v2399_v30, 4  ;;  %v2414_v22 = vrot.slane %v2413_v35, 4  ;;  %v2428_v4 = vrot.slane %v2427_v33, 4  ;;  %v2442_v28 = vrot.slane %v2441_v17, 4 }
 0x1a2   : > { %v2394_v25 = vadd.f32 %v2393_v5, %v2392_v57  ;;  %v2408_v6 = vadd.f32 %v2407_v21, %v2406_v53  ;;  %v2422_v41 = vadd.f32 %v2421_v9, %v2420_v12  ;;  %v2436_v38 = vadd.f32 %v2435_v24, %v2434_v48  ;;  %v4198_v12 = vpop.f32.mrf.mxu1 }
 0x1a3   : > { %v2401_v50 = vadd.f32 %v2400_v42, %v2399_v30  ;;  %v2415_v1 = vadd.f32 %v2414_v22, %v2413_v35  ;;  %v2429_v51 = vadd.f32 %v2428_v4, %v2427_v33  ;;  %v2443_v54 = vadd.f32 %v2442_v28, %v2441_v17 }
 0x1a4   : > { %v2395_v44 = vrot.slane %v2394_v25, 2  ;;  %v2409_v40 = vrot.slane %v2408_v6, 2  ;;  %v2423_v13 = vrot.slane %v2422_v41, 2  ;;  %v2437_v16 = vrot.slane %v2436_v38, 2 }
 0x1a5   : > { %v2402_v63 = vrot.slane %v2401_v50, 2  ;;  %v2416_v43 = vrot.slane %v2415_v1, 2  ;;  %v2430_v3 = vrot.slane %v2429_v51, 2  ;;  %v2444_v37 = vrot.slane %v2443_v54, 2 }
 0x1a6   : > { %v2396_v57 = vadd.f32 %v2395_v44, %v2394_v25  ;;  %v2410_v9 = vadd.f32 %v2409_v40, %v2408_v6  ;;  %v2424_v24 = vadd.f32 %v2423_v13, %v2422_v41  ;;  %v2438_v53 = vadd.f32 %v2437_v16, %v2436_v38  ;;  %v4202_v44 = vpop.f32.mrf.mxu1  ;;  %v4568_v13 = vld [vmem:[#allocation30_spill] sm:$0xff] }
 0x1a7   : > { %v2403_v22 = vadd.f32 %v2402_v63, %v2401_v50  ;;  %v2417_v48 = vadd.f32 %v2416_v43, %v2415_v1  ;;  %v2431_v4 = vadd.f32 %v2430_v3, %v2429_v51  ;;  %v2445_v30 = vadd.f32 %v2444_v37, %v2443_v54  ;;  %v4567_v54 = vld [vmem:[#allocation29_spill] sm:$0xff]  ;;  %v4570_v3 = vld [vmem:[#allocation34_spill] sm:$0xff] }
 0x1a8   : > { %v2397_v35 = vrot.slane %v2396_v57, 1  ;;  %v2411_v33 = vrot.slane %v2410_v9, 1  ;;  %v2425_v17 = vrot.slane %v2424_v24, 1  ;;  %v2439_v5 = vrot.slane %v2438_v53, 1  ;;  %v4569_v63 = vld [vmem:[#allocation33_spill] sm:$0xff] }
 0x1a9   : > { %v2404_v21 = vrot.slane %v2403_v22, 1  ;;  %v2418_v42 = vrot.slane %v2417_v48, 1  ;;  %v2432_v28 = vrot.slane %v2431_v4, 1  ;;  %v2446_v8 = vrot.slane %v2445_v30, 1 }
 0x1aa   : > { %v2398_v25 = vadd.f32 %v2397_v35, %v2396_v57  ;;  %v2412_v6 = vadd.f32 %v2411_v33, %v2410_v9  ;;  %v2426_v41 = vadd.f32 %v2425_v17, %v2424_v24  ;;  %v2440_v38 = vadd.f32 %v2439_v5, %v2438_v53  ;;  %v4572_v57 = vld [vmem:[#allocation32_spill] sm:$0xff]  ;;  %v4573_v24 = vld [vmem:[#allocation35_spill] sm:$0xff] }
 0x1ab   : > { %v2405_v50 = vadd.f32 %v2404_v21, %v2403_v22  ;;  %v2419_v1 = vadd.f32 %v2418_v42, %v2417_v48  ;;  %v2433_v51 = vadd.f32 %v2432_v28, %v2431_v4  ;;  %v2447_v37 = vadd.f32 %v2446_v8, %v2445_v30  ;;  %v4574_v35 = vld [vmem:[#allocation36_spill] sm:$0xff]  ;;  %v4212_v22 = vpop.f32.mrf.mxu0  ;;  %v4224_v30 = vpop.f32.mrf.mxu1 }
 0x1ac   : > { %v2616_v40 = vadd.f32 %v2398_v25, %v4567_v54  ;;  %v2618_v16 = vadd.f32 %v2412_v6, %v4568_v13  ;;  %v2620_v43 = vadd.f32 %v2426_v41, %v4569_v63  ;;  %v2622_v10 = vadd.f32 %v2440_v38, %v4570_v3 }
 0x1ad   : > { %v2617_v26 = vadd.f32 %v2405_v50, %v4571_v11  ;;  %v2619_v9 = vadd.f32 %v2419_v1, %v4572_v57  ;;  %v2621_v53 = vadd.f32 %v2433_v51, %v4573_v24  ;;  %v2623_v33 = vadd.f32 %v2447_v37, %v4574_v35  ;;  %v4248_v6 = vpop.f32.mrf.mxu0 }
 0x1ae   : > { %v4215_v8 = vsel %vm2680_vm1, %v2620_v43, %v2616_v40  ;;  %v4218_v48 = vsel %vm2680_vm1, %v2622_v10, %v2618_v16  ;;  %v2345_v4 = vmul.f32 %v4070_v20, %v4126_v58  ;;  %v2348_v11 = vmul.f32 %v4074_v49, %v4150_v2 }
 0x1af   : > { %v4227_v17 = vsel %vm2680_vm1, %v2621_v53, %v2617_v26  ;;  %v4230_v5 = vsel %vm2680_vm1, %v2623_v33, %v2619_v9  ;;  %v2350_v21 = vmul.f32 %v4082_v62, %v4152_v29  ;;  %v2349_v10 = vmul.f32 %v4096_v15, %v4160_v39  ;;  %v4262_v13 = vpop.f32.mrf.mxu0 }
 0x1b0   : > { %v2347_v20 = vmul.f32 %v4072_v47, %v4128_v52  ;;  %v2448_v42 = vadd.f32 %v2348_v11, %v4166_v7  ;;  %v2351_v49 = vmul.f32 %v4099_v19, %v4162_v45  ;;  %v2352_v26 = vmul.f32 %v4103_v36, %v4111_v14  ;;  %v4254_v36 = vpop.f32.mrf.mxu1 }
 0x1b1   : > { %v2462_v28 = vadd.f32 %v2350_v21, %v4170_v31  ;;  %v2455_v25 = vadd.f32 %v2349_v10, %v2345_v4  ;;  %v2354_v62 = vmul.f32 %v4113_v55, %v4121_v0  ;;  %v2353_v15 = vmul.f32 %v4132_v59, %v4126_v58 }
 0x1b2   : > { %v2449_v47 = vrot.slane %v2448_v42, 4  ;;  %v2469_v41 = vadd.f32 %v2351_v49, %v2347_v20  ;;  %v2355_v7 = vmul.f32 %v4134_v60, %v4128_v52  ;;  %v2356_v19 = vmul.f32 %v4148_v23, %v4150_v2  ;;  %v4264_v3 = vpop.f32.mrf.mxu1  ;;  %v4266_v20 = vpop.f32.mrf.mxu0 }
 0x1b3   : > { %v2463_v31 = vrot.slane %v2462_v28, 4  ;;  %v2456_v38 = vrot.slane %v2455_v25, 4  ;;  %v2358_v55 = vmul.f32 %v4158_v34, %v4152_v29  ;;  %v2357_v59 = vmul.f32 %v4188_v27, %v4160_v39 }
 0x1b4   : > { %v2450_v50 = vadd.f32 %v2449_v47, %v2448_v42  ;;  %v2470_v1 = vrot.slane %v2469_v41, 4  ;;  %v2476_v51 = vadd.f32 %v2356_v19, %v2352_v26  ;;  %v2359_v37 = vmul.f32 %v4190_v61, %v4162_v45 }
 0x1b5   : > { %v2464_v60 = vadd.f32 %v2463_v31, %v2462_v28  ;;  %v2457_v54 = vadd.f32 %v2456_v38, %v2455_v25  ;;  %v2490_v23 = vadd.f32 %v2358_v55, %v2354_v62  ;;  %v2483_v40 = vadd.f32 %v2357_v59, %v2353_v15  ;;  %v4268_v25 = vpop.f32.mrf.mxu1 }
 0x1b6   : > { %v2451_v16 = vrot.slane %v2450_v50, 2  ;;  %v2471_v63 = vadd.f32 %v2470_v1, %v2469_v41  ;;  %v2477_v43 = vrot.slane %v2476_v51, 4  ;;  %v2497_v34 = vadd.f32 %v2359_v37, %v2355_v7  ;;  %v4575_v37 = vld [vmem:[#allocation11_spill] sm:$0xff] }
 0x1b7   : > { %v2465_v27 = vrot.slane %v2464_v60, 2  ;;  %v2458_v57 = vrot.slane %v2457_v54, 2  ;;  %v2491_v9 = vrot.slane %v2490_v23, 4  ;;  %v2484_v24 = vrot.slane %v2483_v40, 4 }
 0x1b8   : > { %v2452_v53 = vadd.f32 %v2451_v16, %v2450_v50  ;;  %v2472_v35 = vrot.slane %v2471_v63, 2  ;;  %v2478_v61 = vadd.f32 %v2477_v43, %v2476_v51  ;;  %v2498_v33 = vrot.slane %v2497_v34, 4  ;;  %v2140_v51 = vpop.f32.mrf.mxu0  ;;  %v2301_v16 = vpop.f32.mrf.mxu1 }
 0x1b9   : > { %v2466_v4 = vadd.f32 %v2465_v27, %v2464_v60  ;;  %v2459_v11 = vadd.f32 %v2458_v57, %v2457_v54  ;;  %v2492_v21 = vadd.f32 %v2491_v9, %v2490_v23  ;;  %v2485_v10 = vadd.f32 %v2484_v24, %v2483_v40 }
 0x1ba   : > { %v2453_v42 = vrot.slane %v2452_v53, 1  ;;  %v2473_v49 = vadd.f32 %v2472_v35, %v2471_v63  ;;  %v2479_v26 = vrot.slane %v2478_v61, 2  ;;  %v2499_v28 = vadd.f32 %v2498_v33, %v2497_v34  ;;  %v4576_v63 = vld [vmem:[#allocation12_spill] sm:$0xff]  ;;  %v4577_v34 = vld [vmem:[#allocation13_spill] sm:$0xff] }
 0x1bb   : > { %v2467_v62 = vrot.slane %v2466_v4, 1  ;;  %v2460_v15 = vrot.slane %v2459_v11, 1  ;;  %v2493_v47 = vrot.slane %v2492_v21, 2  ;;  %v2486_v41 = vrot.slane %v2485_v10, 2 }
 0x1bc   : > { %v2454_v7 = vadd.f32 %v2453_v42, %v2452_v53  ;;  %v2474_v19 = vrot.slane %v2473_v49, 1  ;;  %v2480_v31 = vadd.f32 %v2479_v26, %v2478_v61  ;;  %v2500_v38 = vrot.slane %v2499_v28, 2  ;;  %v4578_v53 = vld [vmem:[#allocation14_spill] sm:$0xff]  ;;  %v4280_v42 = vpop.f32.mrf.mxu0  ;;  %v4579_v26 = vld [vmem:[#allocation15_spill] sm:$0xff] }
 0x1bd   : > { %v2468_v55 = vadd.f32 %v2467_v62, %v2466_v4  ;;  %v2461_v59 = vadd.f32 %v2460_v15, %v2459_v11  ;;  %v2494_v50 = vadd.f32 %v2493_v47, %v2492_v21  ;;  %v2487_v1 = vadd.f32 %v2486_v41, %v2485_v10  ;;  %v4285_v62 = vpop.f32.mrf.mxu1  ;;  %v4580_v15 = vld [vmem:[#allocation16_spill] sm:$0xff]  ;;  %v4581_v41 = vld [vmem:[#allocation17_spill] sm:$0xff] }
 0x1be   : > { %v2624_v60 = vadd.f32 %v2454_v7, %v4575_v37  ;;  %v2475_v54 = vadd.f32 %v2474_v19, %v2473_v49  ;;  %v2481_v23 = vrot.slane %v2480_v31, 1  ;;  %v2501_v40 = vadd.f32 %v2500_v38, %v2499_v28 }
 0x1bf   : > { %v2626_v43 = vadd.f32 %v2468_v55, %v4576_v63  ;;  %v2625_v27 = vadd.f32 %v2461_v59, %v4577_v34  ;;  %v2495_v57 = vrot.slane %v2494_v50, 1  ;;  %v2488_v9 = vrot.slane %v2487_v1, 1 }
 0x1c0   : > { %v2683_v24 = vsel %vm2682_vm2, %v2624_v60, %v4215_v8  ;;  %v2627_v35 = vadd.f32 %v2475_v54, %v4578_v53  ;;  %v2482_v61 = vadd.f32 %v2481_v23, %v2480_v31  ;;  %v2502_v33 = vrot.slane %v2501_v40, 1  ;;  %v4582_v31 = vld [vmem:[#allocation18_spill] sm:$0xff]  ;;  %v4320_v54 = vpop.f32.mrf.mxu1 }
 0x1c1   : > { %v2702_v4 = vsel %vm2682_vm2, %v2626_v43, %v4218_v48  ;;  %v2695_v11 = vsel %vm2682_vm2, %v2625_v27, %v4227_v17  ;;  %v2496_v21 = vadd.f32 %v2495_v57, %v2494_v50  ;;  %v2489_v10 = vadd.f32 %v2488_v9, %v2487_v1  ;;  %v4311_v1 = vpop.f32.mrf.mxu0 }
 0x1c2   : > { %v2709_v49 = vsel %vm2682_vm2, %v2627_v35, %v4230_v5  ;;  %v2628_v28 = vadd.f32 %v2482_v61, %v4579_v26  ;;  %v2503_v8 = vadd.f32 %v2502_v33, %v2501_v40  ;;  %v2360_v48 = vmul.f32 %v4192_v18, %v4111_v14  ;;  %v4337_v35 = vpop.f32.mrf.mxu1 }
 0x1c3   : > { %v2630_v47 = vadd.f32 %v2496_v21, %v4580_v15  ;;  %v2629_v7 = vadd.f32 %v2489_v10, %v4581_v41  ;;  %v2362_v17 = vmul.f32 %v4194_v46, %v4121_v0  ;;  %v2361_v38 = vmul.f32 %v4196_v56, %v4126_v58 }
 0x1c4   : > { %v4294_v19 = vsel %vm2684_vm3, %v2628_v28, %v2683_v24  ;;  %v2631_v5 = vadd.f32 %v2503_v8, %v4582_v31  ;;  %v2364_v55 = vmul.f32 %v4200_v32, %v4150_v2  ;;  %v2363_v18 = vmul.f32 %v4198_v12, %v4128_v52  ;;  %v4342_v41 = vpop.f32.mrf.mxu1 }
 0x1c5   : > { %v4302_v59 = vsel %vm2684_vm3, %v2630_v47, %v2702_v4  ;;  %v4305_v50 = vsel %vm2684_vm3, %v2629_v7, %v2695_v11  ;;  %v2366_v46 = vmul.f32 %v4202_v44, %v4152_v29  ;;  %v2365_v32 = vmul.f32 %v4212_v22, %v4160_v39 }
 0x1c6   : > { %v4314_v37 = vsel %vm2684_vm3, %v2631_v5, %v2709_v49  ;;  %v2504_v56 = vadd.f32 %v2364_v55, %v2360_v48  ;;  %v2367_v60 = vmul.f32 %v4224_v30, %v4162_v45  ;;  %v2368_v12 = vmul.f32 %v4248_v6, %v4111_v14  ;;  %v4334_v6 = vpop.f32.mrf.mxu0 }
 0x1c7   : > { %v2518_v23 = vadd.f32 %v2366_v46, %v2362_v17  ;;  %v2370_v44 = vmul.f32 %v4254_v36, %v4121_v0  ;;  %v2511_v63 = vadd.f32 %v2365_v32, %v2361_v38  ;;  %v2369_v34 = vmul.f32 %v4262_v13, %v4126_v58 }
 0x1c8   : > { %v2505_v40 = vrot.slane %v2504_v56, 4  ;;  %v2525_v43 = vadd.f32 %v2367_v60, %v2363_v18  ;;  %v2371_v22 = vmul.f32 %v4264_v3, %v4128_v52  ;;  %v2372_v30 = vmul.f32 %v4266_v20, %v4150_v2  ;;  %v4340_v28 = vpop.f32.mrf.mxu0 }
 0x1c9   : > { %v2519_v27 = vrot.slane %v2518_v23, 4  ;;  %v2374_v57 = vmul.f32 %v4268_v25, %v4152_v29  ;;  %v2512_v36 = vrot.slane %v2511_v63, 4  ;;  %v2373_v53 = vmul.f32 %v2140_v51, %v4160_v39 }
 0x1ca   : > { %v2506_v9 = vadd.f32 %v2505_v40, %v2504_v56  ;;  %v2526_v24 = vrot.slane %v2525_v43, 4  ;;  %v2532_v61 = vadd.f32 %v2372_v30, %v2368_v12  ;;  %v2375_v3 = vmul.f32 %v2301_v16, %v4162_v45  ;;  %v2156_v60 = vpop.f32.mrf.mxu0  ;;  %v4583_v30 = vld [vmem:[#allocation37_spill] sm:$0xff] }
 0x1cb   : > { %v2520_v13 = vadd.f32 %v2519_v27, %v2518_v23  ;;  %v2546_v33 = vadd.f32 %v2374_v57, %v2370_v44  ;;  %v2513_v20 = vadd.f32 %v2512_v36, %v2511_v63  ;;  %v2539_v21 = vadd.f32 %v2373_v53, %v2369_v34  ;;  %v2317_v63 = vpop.f32.mrf.mxu1  ;;  %v4584_v53 = vld [vmem:[#allocation38_spill] sm:$0xff] }
 0x1cc   : > { %v2507_v4 = vrot.slane %v2506_v9, 2  ;;  %v2527_v11 = vadd.f32 %v2526_v24, %v2525_v43  ;;  %v2533_v10 = vrot.slane %v2532_v61, 4  ;;  %v2553_v26 = vadd.f32 %v2375_v3, %v2371_v22 }
 0x1cd   : > { %v2521_v25 = vrot.slane %v2520_v13, 2  ;;  %v2547_v49 = vrot.slane %v2546_v33, 4  ;;  %v2514_v51 = vrot.slane %v2513_v20, 2  ;;  %v2540_v47 = vrot.slane %v2539_v21, 4 }
 0x1ce   : > { %v2508_v8 = vadd.f32 %v2507_v4, %v2506_v9  ;;  %v2528_v15 = vrot.slane %v2527_v11, 2  ;;  %v2534_v48 = vadd.f32 %v2533_v10, %v2532_v61  ;;  %v2554_v16 = vrot.slane %v2553_v26, 4  ;;  %v2158_v4 = vpop.f32.mrf.mxu0 }
 0x1cf   : > { %v2522_v7 = vadd.f32 %v2521_v25, %v2520_v13  ;;  %v2548_v17 = vadd.f32 %v2547_v49, %v2546_v33  ;;  %v2515_v5 = vadd.f32 %v2514_v51, %v2513_v20  ;;  %v2541_v55 = vadd.f32 %v2540_v47, %v2539_v21  ;;  %v4586_v25 = vld [vmem:[#allocation40_spill] sm:$0xff] }
 0x1d0   : > { %v2509_v31 = vrot.slane %v2508_v8, 1  ;;  %v2529_v38 = vadd.f32 %v2528_v15, %v2527_v11  ;;  %v2535_v46 = vrot.slane %v2534_v48, 2  ;;  %v2555_v32 = vadd.f32 %v2554_v16, %v2553_v26  ;;  %v4585_v11 = vld [vmem:[#allocation39_spill] sm:$0xff]  ;;  %v2319_v26 = vpop.f32.mrf.mxu1  ;;  %v4587_v16 = vld [vmem:[#allocation41_spill] sm:$0xff] }
 0x1d1   : > { %v2523_v18 = vrot.slane %v2522_v7, 1  ;;  %v2549_v56 = vrot.slane %v2548_v17, 2  ;;  %v2516_v12 = vrot.slane %v2515_v5, 1  ;;  %v2542_v40 = vrot.slane %v2541_v55, 2 }
 0x1d2   : > { %v2510_v23 = vadd.f32 %v2509_v31, %v2508_v8  ;;  %v2530_v44 = vrot.slane %v2529_v38, 1  ;;  %v2536_v34 = vadd.f32 %v2535_v46, %v2534_v48  ;;  %v2556_v22 = vrot.slane %v2555_v32, 2  ;;  %v4589_v46 = vld [vmem:[#allocation19_spill] sm:$0xff] }
 0x1d3   : > { %v2524_v43 = vadd.f32 %v2523_v18, %v2522_v7  ;;  %v2550_v27 = vadd.f32 %v2549_v56, %v2548_v17  ;;  %v2517_v9 = vadd.f32 %v2516_v12, %v2515_v5  ;;  %v2543_v24 = vadd.f32 %v2542_v40, %v2541_v55  ;;  %v4588_v5 = vld [vmem:[#allocation42_spill] sm:$0xff]  ;;  %v2162_v18 = vpop.f32.mrf.mxu0 }
 0x1d4   : > { %v2632_v57 = vadd.f32 %v2510_v23, %v4583_v30  ;;  %v2531_v36 = vadd.f32 %v2530_v44, %v2529_v38  ;;  %v2537_v61 = vrot.slane %v2536_v34, 1  ;;  %v2557_v3 = vadd.f32 %v2556_v22, %v2555_v32  ;;  %v2323_v32 = vpop.f32.mrf.mxu1 }
 0x1d5   : > { %v2634_v13 = vadd.f32 %v2524_v43, %v4584_v53  ;;  %v2551_v33 = vrot.slane %v2550_v27, 1  ;;  %v2633_v21 = vadd.f32 %v2517_v9, %v4585_v11  ;;  %v2544_v49 = vrot.slane %v2543_v24, 1 }
 0x1d6   : > { %v2687_v20 = vsel %vm2686_vm4, %v2632_v57, %v4294_v19  ;;  %v2635_v10 = vadd.f32 %v2531_v36, %v4586_v25  ;;  %v2538_v51 = vadd.f32 %v2537_v61, %v2536_v34  ;;  %v2558_v47 = vrot.slane %v2557_v3, 1  ;;  %v2164_v57 = vpop.f32.mrf.mxu0  ;;  %v2325_v53 = vpop.f32.mrf.mxu1 }
 0x1d7   : > { %v2704_v8 = vsel %vm2686_vm4, %v2634_v13, %v4302_v59  ;;  %v2552_v15 = vadd.f32 %v2551_v33, %v2550_v27  ;;  %v2697_v7 = vsel %vm2686_vm4, %v2633_v21, %v4305_v50  ;;  %v2545_v17 = vadd.f32 %v2544_v49, %v2543_v24 }
 0x1d8   : > { %v2711_v48 = vsel %vm2686_vm4, %v2635_v10, %v4314_v37  ;;  %v2376_v19 = vmul.f32 %v4280_v42, %v4111_v14  ;;  %v2636_v31 = vadd.f32 %v2538_v51, %v4587_v16  ;;  %v2559_v55 = vadd.f32 %v2558_v47, %v2557_v3 }
 0x1d9   : > { %v2638_v38 = vadd.f32 %v2552_v15, %v4588_v5  ;;  %v2378_v59 = vmul.f32 %v4285_v62, %v4121_v0  ;;  %v2637_v56 = vadd.f32 %v2545_v17, %v4589_v46  ;;  %v2377_v50 = vmul.f32 %v4311_v1, %v4126_v58  ;;  %v4590_v62 = vld [vmem:[#allocation20_spill] sm:$0xff] }
 0x1da   : > { %v2379_v37 = vmul.f32 %v4320_v54, %v4128_v52  ;;  %v2380_v42 = vmul.f32 %v4334_v6, %v4150_v2  ;;  %v4370_v23 = vsel %vm2688_vm5, %v2636_v31, %v2687_v20  ;;  %v2639_v44 = vadd.f32 %v2559_v55, %v4590_v62 }
 0x1db   : > { %v4373_v12 = vsel %vm2688_vm5, %v2638_v38, %v2704_v8  ;;  %v2382_v40 = vmul.f32 %v4337_v35, %v4152_v29  ;;  %v4379_v1 = vsel %vm2688_vm5, %v2637_v56, %v2697_v7  ;;  %v2381_v54 = vmul.f32 %v4340_v28, %v4160_v39 }
 0x1dc   : > { %v2560_v43 = vadd.f32 %v2380_v42, %v2376_v19  ;;  %v2383_v6 = vmul.f32 %v4342_v41, %v4162_v45  ;;  %v4386_v34 = vsel %vm2688_vm5, %v2639_v44, %v2711_v48  ;;  %v2384_v22 = vmul.f32 %v2156_v60, %v4111_v14 }
 0x1dd   : > { %v2574_v27 = vadd.f32 %v2382_v40, %v2378_v59  ;;  %v2386_v30 = vmul.f32 %v2317_v63, %v4121_v0  ;;  %v2567_v9 = vadd.f32 %v2381_v54, %v2377_v50  ;;  %v2385_v24 = vmul.f32 %v2158_v4, %v4126_v58  ;;  %v4592_v54 = vld [vmem:[#allocation22_spill] sm:$0xff] }
 0x1de   : > { %v2561_v35 = vrot.slane %v2560_v43, 4  ;;  %v2581_v36 = vadd.f32 %v2383_v6, %v2379_v37  ;;  %v2387_v28 = vmul.f32 %v2319_v26, %v4128_v52  ;;  %v2388_v41 = vmul.f32 %v2162_v18, %v4150_v2 }
 0x1df   : > { %v2575_v13 = vrot.slane %v2574_v27, 4  ;;  %v2390_v61 = vmul.f32 %v2323_v32, %v4152_v29  ;;  %v2568_v3 = vrot.slane %v2567_v9, 4  ;;  %v2389_v14 = vmul.f32 %v2164_v57, %v4160_v39  ;;  %v4591_v32 = vld [vmem:[#allocation21_spill] sm:$0xff]  ;;  %v4593_v57 = vld [vmem:[#allocation23_spill] sm:$0xff] }
 0x1e0   : > { %v2562_v33 = vadd.f32 %v2561_v35, %v2560_v43  ;;  %v2582_v20 = vrot.slane %v2581_v36, 4  ;;  %v2588_v60 = vadd.f32 %v2388_v41, %v2384_v22  ;;  %v2391_v11 = vmul.f32 %v2325_v53, %v4162_v45 }
 0x1e1   : > { %v2576_v0 = vadd.f32 %v2575_v13, %v2574_v27  ;;  %v2602_v63 = vadd.f32 %v2390_v61, %v2386_v30  ;;  %v2569_v58 = vadd.f32 %v2568_v3, %v2567_v9  ;;  %v2595_v25 = vadd.f32 %v2389_v14, %v2385_v24  ;;  %v4594_v9 = vld [vmem:[#allocation24_spill] sm:$0xff] }
 0x1e2   : > { %v2563_v21 = vrot.slane %v2562_v33, 2  ;;  %v2583_v4 = vadd.f32 %v2582_v20, %v2581_v36  ;;  %v2589_v52 = vrot.slane %v2588_v60, 4  ;;  %v2609_v49 = vadd.f32 %v2391_v11, %v2387_v28  ;;  %v4595_v20 = vld [vmem:[#allocation9_spill] sm:$0xff] }
 0x1e3   : > { %v2577_v10 = vrot.slane %v2576_v0, 2  ;;  %v2603_v2 = vrot.slane %v2602_v63, 4  ;;  %v2570_v26 = vrot.slane %v2569_v58, 2  ;;  %v2596_v51 = vrot.slane %v2595_v25, 4 }
 0x1e4   : > { %v2564_v29 = vadd.f32 %v2563_v21, %v2562_v33  ;;  %v2584_v8 = vrot.slane %v2583_v4, 2  ;;  %v2590_v39 = vadd.f32 %v2589_v52, %v2588_v60  ;;  %v2610_v7 = vrot.slane %v2609_v49, 4  ;;  %v4597_v21 = vld [vmem:[#allocation7_spill] sm:$0xff] }
 0x1e5   : > { %v2578_v15 = vadd.f32 %v2577_v10, %v2576_v0  ;;  %v2604_v47 = vadd.f32 %v2603_v2, %v2602_v63  ;;  %v2571_v17 = vadd.f32 %v2570_v26, %v2569_v58  ;;  %v2597_v19 = vadd.f32 %v2596_v51, %v2595_v25  ;;  %v4596_v0 = vld [vmem:[#allocation10_spill] sm:$0xff]  ;;  %v4598_v58 = vld [vmem:[#allocation5_spill] sm:$0xff] }
 0x1e6   : > { %v2565_v48 = vrot.slane %v2564_v29, 1  ;;  %v2585_v45 = vadd.f32 %v2584_v8, %v2583_v4  ;;  %v2591_v31 = vrot.slane %v2590_v39, 2  ;;  %v2611_v38 = vadd.f32 %v2610_v7, %v2609_v49 }
 0x1e7   : > { %v2579_v16 = vrot.slane %v2578_v15, 1  ;;  %v2605_v5 = vrot.slane %v2604_v47, 2  ;;  %v2572_v59 = vrot.slane %v2571_v17, 1  ;;  %v2598_v46 = vrot.slane %v2597_v19, 2 }
 0x1e8   : > { %v2566_v55 = vadd.f32 %v2565_v48, %v2564_v29  ;;  %v2586_v18 = vrot.slane %v2585_v45, 1  ;;  %v2592_v50 = vadd.f32 %v2591_v31, %v2590_v39  ;;  %v2612_v42 = vrot.slane %v2611_v38, 2 }
 0x1e9   : > { %v2580_v56 = vadd.f32 %v2579_v16, %v2578_v15  ;;  %v2606_v37 = vadd.f32 %v2605_v5, %v2604_v47  ;;  %v2573_v44 = vadd.f32 %v2572_v59, %v2571_v17  ;;  %v2599_v43 = vadd.f32 %v2598_v46, %v2597_v19 }
 0x1ea   : > { %v2640_v62 = vadd.f32 %v2566_v55, %v4591_v32  ;;  %v2587_v40 = vadd.f32 %v2586_v18, %v2585_v45  ;;  %v2593_v27 = vrot.slane %v2592_v50, 1  ;;  %v2613_v30 = vadd.f32 %v2612_v42, %v2611_v38 }
 0x1eb   : > { %v2642_v6 = vadd.f32 %v2580_v56, %v4592_v54  ;;  %v2607_v22 = vrot.slane %v2606_v37, 1  ;;  %v2641_v35 = vadd.f32 %v2573_v44, %v4593_v57  ;;  %v2600_v24 = vrot.slane %v2599_v43, 1 }
 0x1ec   : > { %v2643_v36 = vadd.f32 %v2587_v40, %v4594_v9  ;;  %v2594_v53 = vadd.f32 %v2593_v27, %v2592_v50  ;;  %v2614_v28 = vrot.slane %v2613_v30, 1  ;;  %v2691_v41 = vsel %vm2690_vm6, %v2640_v62, %v4370_v23 }
 0x1ed   : > { %v2608_v13 = vadd.f32 %v2607_v22, %v2606_v37  ;;  %v2601_v61 = vadd.f32 %v2600_v24, %v2599_v43  ;;  %v2699_v33 = vsel %vm2690_vm6, %v2641_v35, %v4379_v1  ;;  %v2706_v3 = vsel %vm2690_vm6, %v2642_v6, %v4373_v12 }
 0x1ee   : > { %v2644_v14 = vadd.f32 %v2594_v53, %v4595_v20  ;;  %v2615_v63 = vadd.f32 %v2614_v28, %v2613_v30  ;;  %v2713_v11 = vsel %vm2690_vm6, %v2643_v36, %v4386_v34 }
 0x1ef   : > { %v2646_v60 = vadd.f32 %v2608_v13, %v4596_v0  ;;  %v2645_v23 = vadd.f32 %v2601_v61, %v4597_v21 }
 0x1f0   : > { %v2647_v4 = vadd.f32 %v2615_v63, %v4598_v58  ;;  %v2693_v1 = vsel %vm2692_vm7, %v2644_v14, %v2691_v41 }
 0x1f1   : > { %v2707_v12 = vsel %vm2692_vm7, %v2646_v60, %v2706_v3  ;;  %v2700_v25 = vsel %vm2692_vm7, %v2645_v23, %v2699_v33  ;;  %2719 = vst [vmem:[%s176_s28] sm:$0xff] %v2693_v1 }
 0x1f2   : > { %2721 = vst [vmem:[%s176_s28 + $0x10] sm:$0xff] %v2707_v12  ;;  %v2714_v34 = vsel %vm2692_vm7, %v2647_v4, %v2713_v11  ;;  %2720 = vst [vmem:[%s176_s28 + $0x8] sm:$0xff] %v2700_v25 }
 0x1f3   : > { %2722 = vst [vmem:[%s176_s28 + $0x18] sm:$0xff] %v2714_v34 }
 0x1f4   : > { %3067 = shalt.err (!%p3064_p7)
}
 0x1f5   : > { %s3068_s18 = scalar_lea.hbm %s4419_s5, 512  ;;  %s3072_s25 = scalar_lea.hbm %s4476_s2, 2048 }
 0x1f6   : > { %p3069_p9 = scmp.ne.s32.totalorder %s4419_s5, %s3068_s18  ;;  %p3073_p12 = scmp.lt.s32.totalorder %s4419_s5, %s4476_s2 }
 0x1f7   : > { %p3074_p13 = scmp.lt.s32.totalorder %s3072_s25, %s3068_s18 }
 0x1f8   : > { %p3070_p10 = pnand %p3069_p9, %p3216_p3 }
 0x1f9   : > { %p3075_p0 = por %p3074_p13, %p3073_p12 }
 0x1fa   : > { %p3071_p11 = pneg %p3070_p10 }
 0x1fc   : > { %p3076_p1 = pnand %p3075_p0, %p3071_p11 }
 0x1fe   : > { %3079 = shalt.err (!%p3076_p1)
}
 0x1ff   : > { %2981 = dma.vmem_to_hbm [thread:$0]  (%p3216_p3), %s4421_s30, 512, %s4419_s5, %s2724_s6  }
 0x200 PF: > { %p2987_p2 = scmp.ge.s32.totalorder %s3146_s16, 2  ;;  %s2752_s13 = sand.u32 1, %s3118_s9  }
 0x201   : > { %s2753_s28 = scalar_lea.sflag [#allocation3], %s2752_s13 }
 0x202   : > { %p2984_p4 = pnand %p2987_p2, %p3225_p8 }
 0x204   : > { %p2985_p5 = pneg %p2984_p4 }
 0x206   : > { %3113 = dma.done.wait (%p2985_p5), %s2753_s28, 512  }
 0x207   : > { %3115 = vsyncadd (%p2985_p5), %s2753_s28, 4294966784  ;;  %s15_s16 = sadd.s32 1, %s3146_s16   ;;  %s4599_s9 = smov %s3122_s10 }
 0x208   : > { %p12_p6 = scmp.ge.s32.totalorder %s15_s16, 6   ;;  %s4600_s10 = smov %s3126_s11 }
 0x209   : > { %s4601_s11 = smov %s3234_s27  ;;  %s4602_s12 = smov %s3138_s14 }
 0x20a   : > { %s4603_s13 = smov %s3142_s15  ;;  %s4604_s14 = smov %s4607_s19 }
 0x20b   : > { %s4605_s15 = smov %s4611_s20  ;;  %14 = sbr.rel (!%p12_p6) target bundleno = 5 (0x5), region = 73 }
 0x210   :  { %2758 = vsyncpa [#allocation3], 1 }
 0x211   :  { %2760 = vsyncpa [#allocation3 + $0x1], 1 }

</bundles_post_ra>
